<compile_context>
chip_gen: v7x
topology: tpu7x:2x2x1
jax: 0.10.0
libtpu: 0.0.40
codegen_flags: <defaults>
</compile_context>

<pallas_src>
import math
import functools

import jax
import jax.numpy as jnp
from jax.experimental import pallas as pl
from jax.experimental.pallas import tpu as pltpu

EPS = 1e-6
NEG_INF = -1e9


# ----------------------------- in-kernel helpers -----------------------------

def _layernorm(x, a, b):
    # Matches the module's custom LayerNorm:
    #   a * (x - mean) / (std_unbiased + eps) + b   (torch.Tensor.std -> N-1 divisor,
    #                                                eps added OUTSIDE the sqrt)
    d = x.shape[-1]
    mean = jnp.mean(x, axis=-1, keepdims=True)
    var = jnp.sum((x - mean) ** 2, axis=-1, keepdims=True) * (1.0 / (d - 1))
    return a * (x - mean) / (jnp.sqrt(var) + EPS) + b


# --------------------------------- fused kernel --------------------------------

def fused_forward_kernel(x_ref, mask_ref, wi_ref, pe_ref,
                         wqkv_ref, bqkv_ref, wo_ref, bo_ref,
                         ln1a_ref, ln1b_ref, w1_ref, b1_ref, w2_ref, b2_ref,
                         ln2a_ref, ln2b_ref, na_ref, nb_ref, o_ref,
                         *, num_heads, num_layers):
    """Entire AttentionModel forward on the flattened (B*S, ...) activation slab."""
    f32 = jnp.float32
    bf16 = jnp.bfloat16
    D = wi_ref.shape[1]
    H = num_heads
    dk = D // H

    # input2model + positional encoding (input bias pre-folded into pe_ref on the host).
    h = jnp.dot(x_ref[...], wi_ref[...], preferred_element_type=f32) + pe_ref[...]

    # Additive block-diagonal mask (-1e9 on masked / cross-batch pairs); used directly
    # per head -- never broadcast or materialized to (H, N, N).
    mask = mask_ref[...]

    for li in range(num_layers):     # static unroll (L=2); all weights resident in VMEM
        # ---------------- self-attention sublayer (pre-norm) ----------------
        xn = _layernorm(h, ln1a_ref[li], ln1b_ref[li])                     # (N, D) f32
        # Single fused lane-dense QKV projection; 1/sqrt(dk) already folded into Wq/bq.
        qkv = (jnp.dot(xn.astype(bf16), wqkv_ref[li],
                       preferred_element_type=f32) + bqkv_ref[li]).astype(bf16)  # (N, 3D)

        heads = []
        for hh in range(H):          # static unroll; plain 2-D dots (robust lowering)
            q_h = qkv[:, hh * dk:(hh + 1) * dk]                            # (N, dk)
            k_h = qkv[:, D + hh * dk:D + (hh + 1) * dk]
            v_h = qkv[:, 2 * D + hh * dk:2 * D + (hh + 1) * dk]
            # Scores contract the last dim of both operands (no explicit K transpose).
            s = jnp.einsum('qd,kd->qk', q_h, k_h,
                           preferred_element_type=f32) + mask              # (N, N) f32
            m = jnp.max(s, axis=-1, keepdims=True)
            e = jnp.exp(s - m)
            p = e * pl.reciprocal(jnp.sum(e, axis=-1, keepdims=True), approx=True)
            heads.append(jnp.dot(p.astype(bf16), v_h,
                                 preferred_element_type=f32))              # (N, dk)

        # Head concat + single merged output projection (K = H*dk = D).
        ao = jnp.concatenate(heads, axis=-1)                               # (N, D)
        h = h + jnp.dot(ao.astype(bf16), wo_ref[li],
                        preferred_element_type=f32) + bo_ref[li]

        # ---------------- feed-forward sublayer (pre-norm) ----------------
        xn2 = _layernorm(h, ln2a_ref[li], ln2b_ref[li])
        hid = jnp.maximum(
            jnp.dot(xn2.astype(bf16), w1_ref[li], preferred_element_type=f32)
            + b1_ref[li], 0.0)
        h = h + jnp.dot(hid.astype(bf16), w2_ref[li],
                        preferred_element_type=f32) + b2_ref[li]

    # final LayerNorm
    o_ref[...] = _layernorm(h, na_ref[...], nb_ref[...])


# --------------------------------- wrapper ------------------------------------

@functools.partial(jax.jit, static_argnames=("num_heads",))
def attention_model_forward(x, mask, params, *, num_heads):
    """x: (B, S, d_input); mask: (B, S, S), nonzero == masked-out (torch masked_fill)."""
    B, S, Din = x.shape
    D = params["wi"].shape[1]
    L = len(params["layers"])
    H = num_heads
    dk = D // H
    N = B * S
    d_ff = params["layers"][0]["w1"].shape[1]
    bf16 = jnp.bfloat16
    f32 = jnp.float32

    x_flat = x.reshape(N, Din).astype(bf16)

    # Additive block-diagonal mask over the flattened (B*S) axis, built vectorized:
    # diagonal blocks carry the user mask (-1e9 where masked), off-diagonal blocks are
    # fully masked so cross-batch attention is impossible.
    add = jnp.where(mask != 0, jnp.float32(NEG_INF), jnp.float32(0.0))          # (B,S,S)
    intra = (jnp.eye(B, dtype=f32)[:, None, :, None] * add[:, :, None, :]).reshape(N, N)
    seg = jnp.repeat(jnp.arange(B), S)
    mask_big = jnp.where(seg[:, None] != seg[None, :], jnp.float32(NEG_INF),
                         jnp.float32(0.0)) + intra                              # (N, N)

    # Positional encoding tiled per batch row, with the input2model bias folded in.
    pe_bias = jnp.tile(params["pe"], (B, 1)) + params["bi"]                     # (N, D)

    def stack(name):
        return jnp.stack([lp[name] for lp in params["layers"]])

    # Host-side layout prep: fused QKV weight (softmax scale folded into Wq / bq) and
    # bf16 casts for every MXU operand (accumulation stays f32 in-kernel).
    scale = 1.0 / math.sqrt(dk)
    wqkv = jnp.concatenate([stack("wq") * scale, stack("wk"), stack("wv")],
                           axis=-1).astype(bf16)                                # (L, D, 3D)
    bqkv = jnp.concatenate([stack("bq") * scale, stack("bk"), stack("bv")],
                           axis=-1)                                             # (L, 1, 3D)
    wo, bo = stack("wo").astype(bf16), stack("bo")
    ln1a, ln1b = stack("ln1a"), stack("ln1b")
    ln2a, ln2b = stack("ln2a"), stack("ln2b")
    w1, b1 = stack("w1").astype(bf16), stack("b1")
    w2, b2 = stack("w2").astype(bf16), stack("b2")
    wi = params["wi"].astype(bf16)

    operands = (x_flat, mask_big, wi, pe_bias, wqkv, bqkv, wo, bo, ln1a, ln1b,
                w1, b1, w2, b2, ln2a, ln2b, params["norm_a"], params["norm_b"])

    flops = (2 * N * Din * D
             + L * (2 * N * D * 3 * D            # fused QKV projection
                    + 4 * H * N * N * dk         # scores + PV
                    + 2 * N * D * D              # merged output projection
                    + 4 * N * D * d_ff))         # FFN (two matmuls)
    cost = pl.CostEstimate(
        flops=flops,
        transcendentals=L * H * N * N,           # softmax exp
        bytes_accessed=sum(a.size * a.dtype.itemsize for a in operands) + N * D * 4)

    kern = functools.partial(fused_forward_kernel, num_heads=H, num_layers=L)
    out_flat = pl.pallas_call(
        kern,
        out_shape=jax.ShapeDtypeStruct((N, D), jnp.float32),
        # No grid: single invocation; activations and all layer weights stay resident
        # in VMEM for the whole pass (~60 KB total at these shapes).
        compiler_params=pltpu.CompilerParams(vmem_limit_bytes=32 * 1024 * 1024),
        cost_estimate=cost,
    )(*operands)

    return out_flat.reshape(B, S, D)


# --------------------------- params / reference -------------------------------

def make_positional_encoding(seq_len, d_model):
    position = jnp.arange(0.0, seq_len)[:, None]
    div_term = jnp.exp(jnp.arange(0.0, d_model, 2) * -(math.log(10000.0) / d_model))
    pe = jnp.zeros((seq_len, d_model), jnp.float32)
    pe = pe.at[:, 0::2].set(jnp.sin(position * div_term))
    pe = pe.at[:, 1::2].set(jnp.cos(position * div_term))
    return pe


def init_params(key, d_input, d_model, d_ff, num_layers, seq_len):
    def lin(k, fan_in, fan_out):
        return 0.1 * jax.random.normal(k, (fan_in, fan_out), jnp.float32)

    keys = jax.random.split(key, 2 + num_layers)
    params = {
        "wi": lin(keys[0], d_input, d_model),
        "bi": jnp.zeros((1, d_model), jnp.float32),
        "pe": make_positional_encoding(seq_len, d_model),
        "norm_a": jnp.ones((1, d_model), jnp.float32),
        "norm_b": jnp.zeros((1, d_model), jnp.float32),
        "layers": [],
    }
    for li in range(num_layers):
        ks = jax.random.split(keys[2 + li], 6)
        params["layers"].append({
            "wq": lin(ks[0], d_model, d_model), "bq": jnp.zeros((1, d_model), jnp.float32),
            "wk": lin(ks[1], d_model, d_model), "bk": jnp.zeros((1, d_model), jnp.float32),
            "wv": lin(ks[2], d_model, d_model), "bv": jnp.zeros((1, d_model), jnp.float32),
            "wo": lin(ks[3], d_model, d_model), "bo": jnp.zeros((1, d_model), jnp.float32),
            "ln1a": jnp.ones((1, d_model), jnp.float32), "ln1b": jnp.zeros((1, d_model), jnp.float32),
            "w1": lin(ks[4], d_model, d_ff), "b1": jnp.zeros((1, d_ff), jnp.float32),
            "w2": lin(ks[5], d_ff, d_model), "b2": jnp.zeros((1, d_model), jnp.float32),
            "ln2a": jnp.ones((1, d_model), jnp.float32), "ln2b": jnp.zeros((1, d_model), jnp.float32),
        })
    return params


def reference_forward(x, mask, params, num_heads):
    """Pure-JAX f32 mirror of the PyTorch forward (for sanity checking)."""
    hp = jax.lax.Precision.HIGHEST

    def ln(z, a, b):
        d = z.shape[-1]
        mean = jnp.mean(z, -1, keepdims=True)
        std = jnp.sqrt(jnp.sum((z - mean) ** 2, -1, keepdims=True) / (d - 1))
        return a * (z - mean) / (std + EPS) + b

    h = jnp.einsum("bsi,io->bso", x, params["wi"], precision=hp) + params["bi"] + params["pe"]
    B, S, D = h.shape
    dk = D // num_heads
    for p in params["layers"]:
        xn = ln(h, p["ln1a"], p["ln1b"])
        q = jnp.einsum("bsd,de->bse", xn, p["wq"], precision=hp) + p["bq"]
        k = jnp.einsum("bsd,de->bse", xn, p["wk"], precision=hp) + p["bk"]
        v = jnp.einsum("bsd,de->bse", xn, p["wv"], precision=hp) + p["bv"]
        q = q.reshape(B, S, num_heads, dk).transpose(0, 2, 1, 3)
        k = k.reshape(B, S, num_heads, dk).transpose(0, 2, 1, 3)
        v = v.reshape(B, S, num_heads, dk).transpose(0, 2, 1, 3)
        sc = jnp.einsum("bhqd,bhkd->bhqk", q, k, precision=hp) / math.sqrt(dk)
        sc = jnp.where(mask[:, None, :, :] != 0, -1e9, sc)
        pa = jax.nn.softmax(sc, axis=-1)
        at = jnp.einsum("bhqk,bhkd->bhqd", pa, v, precision=hp)
        at = at.transpose(0, 2, 1, 3).reshape(B, S, D)
        at = jnp.einsum("bsd,de->bse", at, p["wo"], precision=hp) + p["bo"]
        h = h + at
        xn2 = ln(h, p["ln2a"], p["ln2b"])
        ff = jnp.maximum(jnp.einsum("bsd,df->bsf", xn2, p["w1"], precision=hp) + p["b1"], 0.0)
        ff = jnp.einsum("bsf,fd->bsd", ff, p["w2"], precision=hp) + p["b2"]
        h = h + ff
    return ln(h, params["norm_a"], params["norm_b"])


# ----------------------------------- main -------------------------------------

if __name__ == "__main__":
    B, S = 2, 8
    d_input, d_model, d_ff, head, num_layer = 16, 32, 64, 4, 2

    root = jax.random.PRNGKey(0)
    k_x, k_p = jax.random.split(root)
    x = jax.random.normal(k_x, (B, S, d_input), jnp.float32)
    # Causal-style mask: positions with mask != 0 are blocked (masked_fill semantics).
    mask = (jnp.arange(S)[None, :] > jnp.arange(S)[:, None]).astype(jnp.float32)
    mask = jnp.broadcast_to(mask, (B, S, S))

    params = init_params(k_p, d_input, d_model, d_ff, num_layer, S)

    out = attention_model_forward(x, mask, params, num_heads=head)
    out = jax.block_until_ready(out)

    ref = reference_forward(x, mask, params, head)
    assert out.shape == (B, S, d_model)
    assert bool(jnp.all(jnp.isfinite(out)))
    # bf16 MXU operands (f32 accumulation) vs the f32 HIGHEST-precision reference:
    # tolerance relaxed from 1e-2 to 2e-2 per the review's correctness note.
    assert bool(jnp.allclose(out, ref, rtol=2e-2, atol=2e-2)), "mismatch vs reference"

    print("KERNEL_OK")
</pallas_src>

<mosaic_0001>
module attributes {stable_mosaic.version = 11 : i64} {
  func.func @fused_forward_kernel(%arg0: memref<16x16xbf16, #tpu.memory_space<vmem>>, %arg1: memref<16x16xf32, #tpu.memory_space<vmem>>, %arg2: memref<16x32xbf16, #tpu.memory_space<vmem>>, %arg3: memref<16x32xf32, #tpu.memory_space<vmem>>, %arg4: memref<2x32x96xbf16, #tpu.memory_space<vmem>>, %arg5: memref<2x1x96xf32, #tpu.memory_space<vmem>>, %arg6: memref<2x32x32xbf16, #tpu.memory_space<vmem>>, %arg7: memref<2x1x32xf32, #tpu.memory_space<vmem>>, %arg8: memref<2x1x32xf32, #tpu.memory_space<vmem>>, %arg9: memref<2x1x32xf32, #tpu.memory_space<vmem>>, %arg10: memref<2x32x64xbf16, #tpu.memory_space<vmem>>, %arg11: memref<2x1x64xf32, #tpu.memory_space<vmem>>, %arg12: memref<2x64x32xbf16, #tpu.memory_space<vmem>>, %arg13: memref<2x1x32xf32, #tpu.memory_space<vmem>>, %arg14: memref<2x1x32xf32, #tpu.memory_space<vmem>>, %arg15: memref<2x1x32xf32, #tpu.memory_space<vmem>>, %arg16: memref<1x32xf32, #tpu.memory_space<vmem>>, %arg17: memref<1x32xf32, #tpu.memory_space<vmem>>, %arg18: memref<16x32xf32, #tpu.memory_space<vmem>>) attributes {dimension_semantics = [], scalar_prefetch = 0 : i64, scratch_operands = 0 : i64, tpu.core_type = #tpu.core_type<tc>} {
    %c0 = arith.constant 0 : index
    %c0_0 = arith.constant 0 : index
    %0 = vector.load %arg0[%c0, %c0_0] : memref<16x16xbf16, #tpu.memory_space<vmem>>, vector<16x16xbf16>
    %c0_1 = arith.constant 0 : index
    %c0_2 = arith.constant 0 : index
    %1 = vector.load %arg2[%c0_1, %c0_2] : memref<16x32xbf16, #tpu.memory_space<vmem>>, vector<16x32xbf16>
    %cst = arith.constant dense<0.000000e+00> : vector<16x32xf32>
    %2 = tpu.matmul %0, %1, %cst {dimension_numbers = #tpu.dot_dimension_numbers<[1], [0], [0], [1], [0, 0, 1, 1], [], []>} : vector<16x16xbf16>, vector<16x32xbf16>, vector<16x32xf32> -> vector<16x32xf32>
    %c0_3 = arith.constant 0 : index
    %c0_4 = arith.constant 0 : index
    %3 = vector.load %arg3[%c0_3, %c0_4] : memref<16x32xf32, #tpu.memory_space<vmem>>, vector<16x32xf32>
    %4 = arith.addf %2, %3 : vector<16x32xf32>
    %c0_5 = arith.constant 0 : index
    %c0_6 = arith.constant 0 : index
    %5 = vector.load %arg1[%c0_5, %c0_6] : memref<16x16xf32, #tpu.memory_space<vmem>>, vector<16x16xf32>
    %c0_7 = arith.constant 0 : index
    %c0_8 = arith.constant 0 : index
    %c0_9 = arith.constant 0 : index
    %6 = vector.load %arg8[%c0_7, %c0_8, %c0_9] : memref<2x1x32xf32, #tpu.memory_space<vmem>>, vector<1x1x32xf32>
    %7 = vector.shape_cast %6 : vector<1x1x32xf32> to vector<1x32xf32>
    %c0_10 = arith.constant 0 : index
    %c0_11 = arith.constant 0 : index
    %c0_12 = arith.constant 0 : index
    %8 = vector.load %arg9[%c0_10, %c0_11, %c0_12] : memref<2x1x32xf32, #tpu.memory_space<vmem>>, vector<1x1x32xf32>
    %9 = vector.shape_cast %8 : vector<1x1x32xf32> to vector<1x32xf32>
    %cst_13 = arith.constant dense<0.000000e+00> : vector<16xf32>
    %10 = vector.multi_reduction <add>, %4, %cst_13 [1] : vector<16x32xf32> to vector<16xf32>
    %11 = vector.shape_cast %10 : vector<16xf32> to vector<16x1xf32>
    %cst_14 = arith.constant 3.200000e+01 : f32
    %12 = vector.broadcast %cst_14 : f32 to vector<16x1xf32>
    %13 = arith.divf %11, %12 : vector<16x1xf32>
    %14 = vector.broadcast %13 : vector<16x1xf32> to vector<16x32xf32>
    %15 = arith.subf %4, %14 : vector<16x32xf32>
    %16 = arith.mulf %15, %15 : vector<16x32xf32>
    %cst_15 = arith.constant dense<0.000000e+00> : vector<16xf32>
    %17 = vector.multi_reduction <add>, %16, %cst_15 [1] : vector<16x32xf32> to vector<16xf32>
    %18 = vector.shape_cast %17 : vector<16xf32> to vector<16x1xf32>
    %cst_16 = arith.constant 0.0322580636 : f32
    %19 = vector.broadcast %cst_16 : f32 to vector<16x1xf32>
    %20 = arith.mulf %18, %19 : vector<16x1xf32>
    %21 = vector.broadcast %13 : vector<16x1xf32> to vector<16x32xf32>
    %22 = arith.subf %4, %21 : vector<16x32xf32>
    %23 = vector.broadcast %7 : vector<1x32xf32> to vector<16x32xf32>
    %24 = arith.mulf %23, %22 : vector<16x32xf32>
    %25 = math.sqrt %20 : vector<16x1xf32>
    %cst_17 = arith.constant 9.99999997E-7 : f32
    %26 = vector.broadcast %cst_17 : f32 to vector<16x1xf32>
    %27 = arith.addf %25, %26 : vector<16x1xf32>
    %28 = vector.broadcast %27 : vector<16x1xf32> to vector<16x32xf32>
    %29 = arith.divf %24, %28 : vector<16x32xf32>
    %30 = vector.broadcast %9 : vector<1x32xf32> to vector<16x32xf32>
    %31 = arith.addf %29, %30 : vector<16x32xf32>
    %32 = arith.truncf %31 : vector<16x32xf32> to vector<16x32xbf16>
    %c0_18 = arith.constant 0 : index
    %c0_19 = arith.constant 0 : index
    %c0_20 = arith.constant 0 : index
    %33 = vector.load %arg4[%c0_18, %c0_19, %c0_20] : memref<2x32x96xbf16, #tpu.memory_space<vmem>>, vector<1x32x96xbf16>
    %34 = vector.shape_cast %33 : vector<1x32x96xbf16> to vector<32x96xbf16>
    %cst_21 = arith.constant dense<0.000000e+00> : vector<16x96xf32>
    %35 = tpu.matmul %32, %34, %cst_21 {dimension_numbers = #tpu.dot_dimension_numbers<[1], [0], [0], [1], [0, 0, 1, 1], [], []>} : vector<16x32xbf16>, vector<32x96xbf16>, vector<16x96xf32> -> vector<16x96xf32>
    %c0_22 = arith.constant 0 : index
    %c0_23 = arith.constant 0 : index
    %c0_24 = arith.constant 0 : index
    %36 = vector.load %arg5[%c0_22, %c0_23, %c0_24] : memref<2x1x96xf32, #tpu.memory_space<vmem>>, vector<1x1x96xf32>
    %37 = vector.shape_cast %36 : vector<1x1x96xf32> to vector<1x96xf32>
    %38 = vector.broadcast %37 : vector<1x96xf32> to vector<16x96xf32>
    %39 = arith.addf %35, %38 : vector<16x96xf32>
    %40 = arith.truncf %39 : vector<16x96xf32> to vector<16x96xbf16>
    %41 = vector.extract_strided_slice %40 {offsets = [0, 0], sizes = [16, 8], strides = [1, 1]} : vector<16x96xbf16> to vector<16x8xbf16>
    %42 = vector.extract_strided_slice %40 {offsets = [0, 32], sizes = [16, 8], strides = [1, 1]} : vector<16x96xbf16> to vector<16x8xbf16>
    %43 = vector.extract_strided_slice %40 {offsets = [0, 64], sizes = [16, 8], strides = [1, 1]} : vector<16x96xbf16> to vector<16x8xbf16>
    "tpu.trace_start"() <{level = 10 : i32, message = "qd,kd->qk"}> : () -> ()
    %cst_25 = arith.constant dense<0.000000e+00> : vector<16x16xf32>
    %44 = tpu.matmul %41, %42, %cst_25 {dimension_numbers = #tpu.dot_dimension_numbers<[1], [1], [0], [0], [0, 0, 1, 0], [], []>} : vector<16x8xbf16>, vector<16x8xbf16>, vector<16x16xf32> -> vector<16x16xf32>
    "tpu.trace_stop"() : () -> ()
    %45 = arith.addf %44, %5 : vector<16x16xf32>
    %cst_26 = arith.constant dense<0xFF800000> : vector<16xf32>
    %46 = vector.multi_reduction <maximumf>, %45, %cst_26 [1] : vector<16x16xf32> to vector<16xf32>
    %47 = vector.shape_cast %46 : vector<16xf32> to vector<16x1xf32>
    %48 = vector.broadcast %47 : vector<16x1xf32> to vector<16x16xf32>
    %49 = arith.subf %45, %48 : vector<16x16xf32>
    %50 = math.exp %49 : vector<16x16xf32>
    %cst_27 = arith.constant dense<0.000000e+00> : vector<16xf32>
    %51 = vector.multi_reduction <add>, %50, %cst_27 [1] : vector<16x16xf32> to vector<16xf32>
    %52 = vector.shape_cast %51 : vector<16xf32> to vector<16x1xf32>
    %53 = tpu.reciprocal %52 {approx = true} : vector<16x1xf32> -> vector<16x1xf32>
    %54 = vector.broadcast %53 : vector<16x1xf32> to vector<16x16xf32>
    %55 = arith.mulf %50, %54 : vector<16x16xf32>
    %56 = arith.truncf %55 : vector<16x16xf32> to vector<16x16xbf16>
    %cst_28 = arith.constant dense<0.000000e+00> : vector<16x8xf32>
    %57 = tpu.matmul %56, %43, %cst_28 {dimension_numbers = #tpu.dot_dimension_numbers<[1], [0], [0], [1], [0, 0, 1, 1], [], []>} : vector<16x16xbf16>, vector<16x8xbf16>, vector<16x8xf32> -> vector<16x8xf32>
    %58 = vector.extract_strided_slice %40 {offsets = [0, 8], sizes = [16, 8], strides = [1, 1]} : vector<16x96xbf16> to vector<16x8xbf16>
    %59 = vector.extract_strided_slice %40 {offsets = [0, 40], sizes = [16, 8], strides = [1, 1]} : vector<16x96xbf16> to vector<16x8xbf16>
    %60 = vector.extract_strided_slice %40 {offsets = [0, 72], sizes = [16, 8], strides = [1, 1]} : vector<16x96xbf16> to vector<16x8xbf16>
    "tpu.trace_start"() <{level = 10 : i32, message = "qd,kd->qk"}> : () -> ()
    %cst_29 = arith.constant dense<0.000000e+00> : vector<16x16xf32>
    %61 = tpu.matmul %58, %59, %cst_29 {dimension_numbers = #tpu.dot_dimension_numbers<[1], [1], [0], [0], [0, 0, 1, 0], [], []>} : vector<16x8xbf16>, vector<16x8xbf16>, vector<16x16xf32> -> vector<16x16xf32>
    "tpu.trace_stop"() : () -> ()
    %62 = arith.addf %61, %5 : vector<16x16xf32>
    %cst_30 = arith.constant dense<0xFF800000> : vector<16xf32>
    %63 = vector.multi_reduction <maximumf>, %62, %cst_30 [1] : vector<16x16xf32> to vector<16xf32>
    %64 = vector.shape_cast %63 : vector<16xf32> to vector<16x1xf32>
    %65 = vector.broadcast %64 : vector<16x1xf32> to vector<16x16xf32>
    %66 = arith.subf %62, %65 : vector<16x16xf32>
    %67 = math.exp %66 : vector<16x16xf32>
    %cst_31 = arith.constant dense<0.000000e+00> : vector<16xf32>
    %68 = vector.multi_reduction <add>, %67, %cst_31 [1] : vector<16x16xf32> to vector<16xf32>
    %69 = vector.shape_cast %68 : vector<16xf32> to vector<16x1xf32>
    %70 = tpu.reciprocal %69 {approx = true} : vector<16x1xf32> -> vector<16x1xf32>
    %71 = vector.broadcast %70 : vector<16x1xf32> to vector<16x16xf32>
    %72 = arith.mulf %67, %71 : vector<16x16xf32>
    %73 = arith.truncf %72 : vector<16x16xf32> to vector<16x16xbf16>
    %cst_32 = arith.constant dense<0.000000e+00> : vector<16x8xf32>
    %74 = tpu.matmul %73, %60, %cst_32 {dimension_numbers = #tpu.dot_dimension_numbers<[1], [0], [0], [1], [0, 0, 1, 1], [], []>} : vector<16x16xbf16>, vector<16x8xbf16>, vector<16x8xf32> -> vector<16x8xf32>
    %75 = vector.extract_strided_slice %40 {offsets = [0, 16], sizes = [16, 8], strides = [1, 1]} : vector<16x96xbf16> to vector<16x8xbf16>
    %76 = vector.extract_strided_slice %40 {offsets = [0, 48], sizes = [16, 8], strides = [1, 1]} : vector<16x96xbf16> to vector<16x8xbf16>
    %77 = vector.extract_strided_slice %40 {offsets = [0, 80], sizes = [16, 8], strides = [1, 1]} : vector<16x96xbf16> to vector<16x8xbf16>
    "tpu.trace_start"() <{level = 10 : i32, message = "qd,kd->qk"}> : () -> ()
    %cst_33 = arith.constant dense<0.000000e+00> : vector<16x16xf32>
    %78 = tpu.matmul %75, %76, %cst_33 {dimension_numbers = #tpu.dot_dimension_numbers<[1], [1], [0], [0], [0, 0, 1, 0], [], []>} : vector<16x8xbf16>, vector<16x8xbf16>, vector<16x16xf32> -> vector<16x16xf32>
    "tpu.trace_stop"() : () -> ()
    %79 = arith.addf %78, %5 : vector<16x16xf32>
    %cst_34 = arith.constant dense<0xFF800000> : vector<16xf32>
    %80 = vector.multi_reduction <maximumf>, %79, %cst_34 [1] : vector<16x16xf32> to vector<16xf32>
    %81 = vector.shape_cast %80 : vector<16xf32> to vector<16x1xf32>
    %82 = vector.broadcast %81 : vector<16x1xf32> to vector<16x16xf32>
    %83 = arith.subf %79, %82 : vector<16x16xf32>
    %84 = math.exp %83 : vector<16x16xf32>
    %cst_35 = arith.constant dense<0.000000e+00> : vector<16xf32>
    %85 = vector.multi_reduction <add>, %84, %cst_35 [1] : vector<16x16xf32> to vector<16xf32>
    %86 = vector.shape_cast %85 : vector<16xf32> to vector<16x1xf32>
    %87 = tpu.reciprocal %86 {approx = true} : vector<16x1xf32> -> vector<16x1xf32>
    %88 = vector.broadcast %87 : vector<16x1xf32> to vector<16x16xf32>
    %89 = arith.mulf %84, %88 : vector<16x16xf32>
    %90 = arith.truncf %89 : vector<16x16xf32> to vector<16x16xbf16>
    %cst_36 = arith.constant dense<0.000000e+00> : vector<16x8xf32>
    %91 = tpu.matmul %90, %77, %cst_36 {dimension_numbers = #tpu.dot_dimension_numbers<[1], [0], [0], [1], [0, 0, 1, 1], [], []>} : vector<16x16xbf16>, vector<16x8xbf16>, vector<16x8xf32> -> vector<16x8xf32>
    %92 = vector.extract_strided_slice %40 {offsets = [0, 24], sizes = [16, 8], strides = [1, 1]} : vector<16x96xbf16> to vector<16x8xbf16>
    %93 = vector.extract_strided_slice %40 {offsets = [0, 56], sizes = [16, 8], strides = [1, 1]} : vector<16x96xbf16> to vector<16x8xbf16>
    %94 = vector.extract_strided_slice %40 {offsets = [0, 88], sizes = [16, 8], strides = [1, 1]} : vector<16x96xbf16> to vector<16x8xbf16>
    "tpu.trace_start"() <{level = 10 : i32, message = "qd,kd->qk"}> : () -> ()
    %cst_37 = arith.constant dense<0.000000e+00> : vector<16x16xf32>
    %95 = tpu.matmul %92, %93, %cst_37 {dimension_numbers = #tpu.dot_dimension_numbers<[1], [1], [0], [0], [0, 0, 1, 0], [], []>} : vector<16x8xbf16>, vector<16x8xbf16>, vector<16x16xf32> -> vector<16x16xf32>
    "tpu.trace_stop"() : () -> ()
    %96 = arith.addf %95, %5 : vector<16x16xf32>
    %cst_38 = arith.constant dense<0xFF800000> : vector<16xf32>
    %97 = vector.multi_reduction <maximumf>, %96, %cst_38 [1] : vector<16x16xf32> to vector<16xf32>
    %98 = vector.shape_cast %97 : vector<16xf32> to vector<16x1xf32>
    %99 = vector.broadcast %98 : vector<16x1xf32> to vector<16x16xf32>
    %100 = arith.subf %96, %99 : vector<16x16xf32>
    %101 = math.exp %100 : vector<16x16xf32>
    %cst_39 = arith.constant dense<0.000000e+00> : vector<16xf32>
    %102 = vector.multi_reduction <add>, %101, %cst_39 [1] : vector<16x16xf32> to vector<16xf32>
    %103 = vector.shape_cast %102 : vector<16xf32> to vector<16x1xf32>
    %104 = tpu.reciprocal %103 {approx = true} : vector<16x1xf32> -> vector<16x1xf32>
    %105 = vector.broadcast %104 : vector<16x1xf32> to vector<16x16xf32>
    %106 = arith.mulf %101, %105 : vector<16x16xf32>
    %107 = arith.truncf %106 : vector<16x16xf32> to vector<16x16xbf16>
    %cst_40 = arith.constant dense<0.000000e+00> : vector<16x8xf32>
    %108 = tpu.matmul %107, %94, %cst_40 {dimension_numbers = #tpu.dot_dimension_numbers<[1], [0], [0], [1], [0, 0, 1, 1], [], []>} : vector<16x16xbf16>, vector<16x8xbf16>, vector<16x8xf32> -> vector<16x8xf32>
    %109 = tpu.concatenate %57, %74, %91, %108 in 1 : vector<16x8xf32>, vector<16x8xf32>, vector<16x8xf32>, vector<16x8xf32> -> vector<16x32xf32>
    %110 = arith.truncf %109 : vector<16x32xf32> to vector<16x32xbf16>
    %c0_41 = arith.constant 0 : index
    %c0_42 = arith.constant 0 : index
    %c0_43 = arith.constant 0 : index
    %111 = vector.load %arg6[%c0_41, %c0_42, %c0_43] : memref<2x32x32xbf16, #tpu.memory_space<vmem>>, vector<1x32x32xbf16>
    %112 = vector.shape_cast %111 : vector<1x32x32xbf16> to vector<32x32xbf16>
    %cst_44 = arith.constant dense<0.000000e+00> : vector<16x32xf32>
    %113 = tpu.matmul %110, %112, %cst_44 {dimension_numbers = #tpu.dot_dimension_numbers<[1], [0], [0], [1], [0, 0, 1, 1], [], []>} : vector<16x32xbf16>, vector<32x32xbf16>, vector<16x32xf32> -> vector<16x32xf32>
    %114 = arith.addf %4, %113 : vector<16x32xf32>
    %c0_45 = arith.constant 0 : index
    %c0_46 = arith.constant 0 : index
    %c0_47 = arith.constant 0 : index
    %115 = vector.load %arg7[%c0_45, %c0_46, %c0_47] : memref<2x1x32xf32, #tpu.memory_space<vmem>>, vector<1x1x32xf32>
    %116 = vector.shape_cast %115 : vector<1x1x32xf32> to vector<1x32xf32>
    %117 = vector.broadcast %116 : vector<1x32xf32> to vector<16x32xf32>
    %118 = arith.addf %114, %117 : vector<16x32xf32>
    %c0_48 = arith.constant 0 : index
    %c0_49 = arith.constant 0 : index
    %c0_50 = arith.constant 0 : index
    %119 = vector.load %arg14[%c0_48, %c0_49, %c0_50] : memref<2x1x32xf32, #tpu.memory_space<vmem>>, vector<1x1x32xf32>
    %120 = vector.shape_cast %119 : vector<1x1x32xf32> to vector<1x32xf32>
    %c0_51 = arith.constant 0 : index
    %c0_52 = arith.constant 0 : index
    %c0_53 = arith.constant 0 : index
    %121 = vector.load %arg15[%c0_51, %c0_52, %c0_53] : memref<2x1x32xf32, #tpu.memory_space<vmem>>, vector<1x1x32xf32>
    %122 = vector.shape_cast %121 : vector<1x1x32xf32> to vector<1x32xf32>
    %cst_54 = arith.constant dense<0.000000e+00> : vector<16xf32>
    %123 = vector.multi_reduction <add>, %118, %cst_54 [1] : vector<16x32xf32> to vector<16xf32>
    %124 = vector.shape_cast %123 : vector<16xf32> to vector<16x1xf32>
    %cst_55 = arith.constant 3.200000e+01 : f32
    %125 = vector.broadcast %cst_55 : f32 to vector<16x1xf32>
    %126 = arith.divf %124, %125 : vector<16x1xf32>
    %127 = vector.broadcast %126 : vector<16x1xf32> to vector<16x32xf32>
    %128 = arith.subf %118, %127 : vector<16x32xf32>
    %129 = arith.mulf %128, %128 : vector<16x32xf32>
    %cst_56 = arith.constant dense<0.000000e+00> : vector<16xf32>
    %130 = vector.multi_reduction <add>, %129, %cst_56 [1] : vector<16x32xf32> to vector<16xf32>
    %131 = vector.shape_cast %130 : vector<16xf32> to vector<16x1xf32>
    %cst_57 = arith.constant 0.0322580636 : f32
    %132 = vector.broadcast %cst_57 : f32 to vector<16x1xf32>
    %133 = arith.mulf %131, %132 : vector<16x1xf32>
    %134 = vector.broadcast %126 : vector<16x1xf32> to vector<16x32xf32>
    %135 = arith.subf %118, %134 : vector<16x32xf32>
    %136 = vector.broadcast %120 : vector<1x32xf32> to vector<16x32xf32>
    %137 = arith.mulf %136, %135 : vector<16x32xf32>
    %138 = math.sqrt %133 : vector<16x1xf32>
    %cst_58 = arith.constant 9.99999997E-7 : f32
    %139 = vector.broadcast %cst_58 : f32 to vector<16x1xf32>
    %140 = arith.addf %138, %139 : vector<16x1xf32>
    %141 = vector.broadcast %140 : vector<16x1xf32> to vector<16x32xf32>
    %142 = arith.divf %137, %141 : vector<16x32xf32>
    %143 = vector.broadcast %122 : vector<1x32xf32> to vector<16x32xf32>
    %144 = arith.addf %142, %143 : vector<16x32xf32>
    %145 = arith.truncf %144 : vector<16x32xf32> to vector<16x32xbf16>
    %c0_59 = arith.constant 0 : index
    %c0_60 = arith.constant 0 : index
    %c0_61 = arith.constant 0 : index
    %146 = vector.load %arg10[%c0_59, %c0_60, %c0_61] : memref<2x32x64xbf16, #tpu.memory_space<vmem>>, vector<1x32x64xbf16>
    %147 = vector.shape_cast %146 : vector<1x32x64xbf16> to vector<32x64xbf16>
    %cst_62 = arith.constant dense<0.000000e+00> : vector<16x64xf32>
    %148 = tpu.matmul %145, %147, %cst_62 {dimension_numbers = #tpu.dot_dimension_numbers<[1], [0], [0], [1], [0, 0, 1, 1], [], []>} : vector<16x32xbf16>, vector<32x64xbf16>, vector<16x64xf32> -> vector<16x64xf32>
    %c0_63 = arith.constant 0 : index
    %c0_64 = arith.constant 0 : index
    %c0_65 = arith.constant 0 : index
    %149 = vector.load %arg11[%c0_63, %c0_64, %c0_65] : memref<2x1x64xf32, #tpu.memory_space<vmem>>, vector<1x1x64xf32>
    %150 = vector.shape_cast %149 : vector<1x1x64xf32> to vector<1x64xf32>
    %151 = vector.broadcast %150 : vector<1x64xf32> to vector<16x64xf32>
    %152 = arith.addf %148, %151 : vector<16x64xf32>
    %cst_66 = arith.constant 0.000000e+00 : f32
    %153 = vector.broadcast %cst_66 : f32 to vector<16x64xf32>
    %154 = arith.maximumf %152, %153 : vector<16x64xf32>
    %155 = arith.truncf %154 : vector<16x64xf32> to vector<16x64xbf16>
    %c0_67 = arith.constant 0 : index
    %c0_68 = arith.constant 0 : index
    %c0_69 = arith.constant 0 : index
    %156 = vector.load %arg12[%c0_67, %c0_68, %c0_69] : memref<2x64x32xbf16, #tpu.memory_space<vmem>>, vector<1x64x32xbf16>
    %157 = vector.shape_cast %156 : vector<1x64x32xbf16> to vector<64x32xbf16>
    %cst_70 = arith.constant dense<0.000000e+00> : vector<16x32xf32>
    %158 = tpu.matmul %155, %157, %cst_70 {dimension_numbers = #tpu.dot_dimension_numbers<[1], [0], [0], [1], [0, 0, 1, 1], [], []>} : vector<16x64xbf16>, vector<64x32xbf16>, vector<16x32xf32> -> vector<16x32xf32>
    %159 = arith.addf %118, %158 : vector<16x32xf32>
    %c0_71 = arith.constant 0 : index
    %c0_72 = arith.constant 0 : index
    %c0_73 = arith.constant 0 : index
    %160 = vector.load %arg13[%c0_71, %c0_72, %c0_73] : memref<2x1x32xf32, #tpu.memory_space<vmem>>, vector<1x1x32xf32>
    %161 = vector.shape_cast %160 : vector<1x1x32xf32> to vector<1x32xf32>
    %162 = vector.broadcast %161 : vector<1x32xf32> to vector<16x32xf32>
    %163 = arith.addf %159, %162 : vector<16x32xf32>
    %c1 = arith.constant 1 : index
    %c0_74 = arith.constant 0 : index
    %c0_75 = arith.constant 0 : index
    %164 = vector.load %arg8[%c1, %c0_74, %c0_75] : memref<2x1x32xf32, #tpu.memory_space<vmem>>, vector<1x1x32xf32>
    %165 = vector.shape_cast %164 : vector<1x1x32xf32> to vector<1x32xf32>
    %c1_76 = arith.constant 1 : index
    %c0_77 = arith.constant 0 : index
    %c0_78 = arith.constant 0 : index
    %166 = vector.load %arg9[%c1_76, %c0_77, %c0_78] : memref<2x1x32xf32, #tpu.memory_space<vmem>>, vector<1x1x32xf32>
    %167 = vector.shape_cast %166 : vector<1x1x32xf32> to vector<1x32xf32>
    %cst_79 = arith.constant dense<0.000000e+00> : vector<16xf32>
    %168 = vector.multi_reduction <add>, %163, %cst_79 [1] : vector<16x32xf32> to vector<16xf32>
    %169 = vector.shape_cast %168 : vector<16xf32> to vector<16x1xf32>
    %cst_80 = arith.constant 3.200000e+01 : f32
    %170 = vector.broadcast %cst_80 : f32 to vector<16x1xf32>
    %171 = arith.divf %169, %170 : vector<16x1xf32>
    %172 = vector.broadcast %171 : vector<16x1xf32> to vector<16x32xf32>
    %173 = arith.subf %163, %172 : vector<16x32xf32>
    %174 = arith.mulf %173, %173 : vector<16x32xf32>
    %cst_81 = arith.constant dense<0.000000e+00> : vector<16xf32>
    %175 = vector.multi_reduction <add>, %174, %cst_81 [1] : vector<16x32xf32> to vector<16xf32>
    %176 = vector.shape_cast %175 : vector<16xf32> to vector<16x1xf32>
    %cst_82 = arith.constant 0.0322580636 : f32
    %177 = vector.broadcast %cst_82 : f32 to vector<16x1xf32>
    %178 = arith.mulf %176, %177 : vector<16x1xf32>
    %179 = vector.broadcast %171 : vector<16x1xf32> to vector<16x32xf32>
    %180 = arith.subf %163, %179 : vector<16x32xf32>
    %181 = vector.broadcast %165 : vector<1x32xf32> to vector<16x32xf32>
    %182 = arith.mulf %181, %180 : vector<16x32xf32>
    %183 = math.sqrt %178 : vector<16x1xf32>
    %cst_83 = arith.constant 9.99999997E-7 : f32
    %184 = vector.broadcast %cst_83 : f32 to vector<16x1xf32>
    %185 = arith.addf %183, %184 : vector<16x1xf32>
    %186 = vector.broadcast %185 : vector<16x1xf32> to vector<16x32xf32>
    %187 = arith.divf %182, %186 : vector<16x32xf32>
    %188 = vector.broadcast %167 : vector<1x32xf32> to vector<16x32xf32>
    %189 = arith.addf %187, %188 : vector<16x32xf32>
    %190 = arith.truncf %189 : vector<16x32xf32> to vector<16x32xbf16>
    %c1_84 = arith.constant 1 : index
    %c0_85 = arith.constant 0 : index
    %c0_86 = arith.constant 0 : index
    %191 = vector.load %arg4[%c1_84, %c0_85, %c0_86] : memref<2x32x96xbf16, #tpu.memory_space<vmem>>, vector<1x32x96xbf16>
    %192 = vector.shape_cast %191 : vector<1x32x96xbf16> to vector<32x96xbf16>
    %cst_87 = arith.constant dense<0.000000e+00> : vector<16x96xf32>
    %193 = tpu.matmul %190, %192, %cst_87 {dimension_numbers = #tpu.dot_dimension_numbers<[1], [0], [0], [1], [0, 0, 1, 1], [], []>} : vector<16x32xbf16>, vector<32x96xbf16>, vector<16x96xf32> -> vector<16x96xf32>
    %c1_88 = arith.constant 1 : index
    %c0_89 = arith.constant 0 : index
    %c0_90 = arith.constant 0 : index
    %194 = vector.load %arg5[%c1_88, %c0_89, %c0_90] : memref<2x1x96xf32, #tpu.memory_space<vmem>>, vector<1x1x96xf32>
    %195 = vector.shape_cast %194 : vector<1x1x96xf32> to vector<1x96xf32>
    %196 = vector.broadcast %195 : vector<1x96xf32> to vector<16x96xf32>
    %197 = arith.addf %193, %196 : vector<16x96xf32>
    %198 = arith.truncf %197 : vector<16x96xf32> to vector<16x96xbf16>
    %199 = vector.extract_strided_slice %198 {offsets = [0, 0], sizes = [16, 8], strides = [1, 1]} : vector<16x96xbf16> to vector<16x8xbf16>
    %200 = vector.extract_strided_slice %198 {offsets = [0, 32], sizes = [16, 8], strides = [1, 1]} : vector<16x96xbf16> to vector<16x8xbf16>
    %201 = vector.extract_strided_slice %198 {offsets = [0, 64], sizes = [16, 8], strides = [1, 1]} : vector<16x96xbf16> to vector<16x8xbf16>
    "tpu.trace_start"() <{level = 10 : i32, message = "qd,kd->qk"}> : () -> ()
    %cst_91 = arith.constant dense<0.000000e+00> : vector<16x16xf32>
    %202 = tpu.matmul %199, %200, %cst_91 {dimension_numbers = #tpu.dot_dimension_numbers<[1], [1], [0], [0], [0, 0, 1, 0], [], []>} : vector<16x8xbf16>, vector<16x8xbf16>, vector<16x16xf32> -> vector<16x16xf32>
    "tpu.trace_stop"() : () -> ()
    %203 = arith.addf %202, %5 : vector<16x16xf32>
    %cst_92 = arith.constant dense<0xFF800000> : vector<16xf32>
    %204 = vector.multi_reduction <maximumf>, %203, %cst_92 [1] : vector<16x16xf32> to vector<16xf32>
    %205 = vector.shape_cast %204 : vector<16xf32> to vector<16x1xf32>
    %206 = vector.broadcast %205 : vector<16x1xf32> to vector<16x16xf32>
    %207 = arith.subf %203, %206 : vector<16x16xf32>
    %208 = math.exp %207 : vector<16x16xf32>
    %cst_93 = arith.constant dense<0.000000e+00> : vector<16xf32>
    %209 = vector.multi_reduction <add>, %208, %cst_93 [1] : vector<16x16xf32> to vector<16xf32>
    %210 = vector.shape_cast %209 : vector<16xf32> to vector<16x1xf32>
    %211 = tpu.reciprocal %210 {approx = true} : vector<16x1xf32> -> vector<16x1xf32>
    %212 = vector.broadcast %211 : vector<16x1xf32> to vector<16x16xf32>
    %213 = arith.mulf %208, %212 : vector<16x16xf32>
    %214 = arith.truncf %213 : vector<16x16xf32> to vector<16x16xbf16>
    %cst_94 = arith.constant dense<0.000000e+00> : vector<16x8xf32>
    %215 = tpu.matmul %214, %201, %cst_94 {dimension_numbers = #tpu.dot_dimension_numbers<[1], [0], [0], [1], [0, 0, 1, 1], [], []>} : vector<16x16xbf16>, vector<16x8xbf16>, vector<16x8xf32> -> vector<16x8xf32>
    %216 = vector.extract_strided_slice %198 {offsets = [0, 8], sizes = [16, 8], strides = [1, 1]} : vector<16x96xbf16> to vector<16x8xbf16>
    %217 = vector.extract_strided_slice %198 {offsets = [0, 40], sizes = [16, 8], strides = [1, 1]} : vector<16x96xbf16> to vector<16x8xbf16>
    %218 = vector.extract_strided_slice %198 {offsets = [0, 72], sizes = [16, 8], strides = [1, 1]} : vector<16x96xbf16> to vector<16x8xbf16>
    "tpu.trace_start"() <{level = 10 : i32, message = "qd,kd->qk"}> : () -> ()
    %cst_95 = arith.constant dense<0.000000e+00> : vector<16x16xf32>
    %219 = tpu.matmul %216, %217, %cst_95 {dimension_numbers = #tpu.dot_dimension_numbers<[1], [1], [0], [0], [0, 0, 1, 0], [], []>} : vector<16x8xbf16>, vector<16x8xbf16>, vector<16x16xf32> -> vector<16x16xf32>
    "tpu.trace_stop"() : () -> ()
    %220 = arith.addf %219, %5 : vector<16x16xf32>
    %cst_96 = arith.constant dense<0xFF800000> : vector<16xf32>
    %221 = vector.multi_reduction <maximumf>, %220, %cst_96 [1] : vector<16x16xf32> to vector<16xf32>
    %222 = vector.shape_cast %221 : vector<16xf32> to vector<16x1xf32>
    %223 = vector.broadcast %222 : vector<16x1xf32> to vector<16x16xf32>
    %224 = arith.subf %220, %223 : vector<16x16xf32>
    %225 = math.exp %224 : vector<16x16xf32>
    %cst_97 = arith.constant dense<0.000000e+00> : vector<16xf32>
    %226 = vector.multi_reduction <add>, %225, %cst_97 [1] : vector<16x16xf32> to vector<16xf32>
    %227 = vector.shape_cast %226 : vector<16xf32> to vector<16x1xf32>
    %228 = tpu.reciprocal %227 {approx = true} : vector<16x1xf32> -> vector<16x1xf32>
    %229 = vector.broadcast %228 : vector<16x1xf32> to vector<16x16xf32>
    %230 = arith.mulf %225, %229 : vector<16x16xf32>
    %231 = arith.truncf %230 : vector<16x16xf32> to vector<16x16xbf16>
    %cst_98 = arith.constant dense<0.000000e+00> : vector<16x8xf32>
    %232 = tpu.matmul %231, %218, %cst_98 {dimension_numbers = #tpu.dot_dimension_numbers<[1], [0], [0], [1], [0, 0, 1, 1], [], []>} : vector<16x16xbf16>, vector<16x8xbf16>, vector<16x8xf32> -> vector<16x8xf32>
    %233 = vector.extract_strided_slice %198 {offsets = [0, 16], sizes = [16, 8], strides = [1, 1]} : vector<16x96xbf16> to vector<16x8xbf16>
    %234 = vector.extract_strided_slice %198 {offsets = [0, 48], sizes = [16, 8], strides = [1, 1]} : vector<16x96xbf16> to vector<16x8xbf16>
    %235 = vector.extract_strided_slice %198 {offsets = [0, 80], sizes = [16, 8], strides = [1, 1]} : vector<16x96xbf16> to vector<16x8xbf16>
    "tpu.trace_start"() <{level = 10 : i32, message = "qd,kd->qk"}> : () -> ()
    %cst_99 = arith.constant dense<0.000000e+00> : vector<16x16xf32>
    %236 = tpu.matmul %233, %234, %cst_99 {dimension_numbers = #tpu.dot_dimension_numbers<[1], [1], [0], [0], [0, 0, 1, 0], [], []>} : vector<16x8xbf16>, vector<16x8xbf16>, vector<16x16xf32> -> vector<16x16xf32>
    "tpu.trace_stop"() : () -> ()
    %237 = arith.addf %236, %5 : vector<16x16xf32>
    %cst_100 = arith.constant dense<0xFF800000> : vector<16xf32>
    %238 = vector.multi_reduction <maximumf>, %237, %cst_100 [1] : vector<16x16xf32> to vector<16xf32>
    %239 = vector.shape_cast %238 : vector<16xf32> to vector<16x1xf32>
    %240 = vector.broadcast %239 : vector<16x1xf32> to vector<16x16xf32>
    %241 = arith.subf %237, %240 : vector<16x16xf32>
    %242 = math.exp %241 : vector<16x16xf32>
    %cst_101 = arith.constant dense<0.000000e+00> : vector<16xf32>
    %243 = vector.multi_reduction <add>, %242, %cst_101 [1] : vector<16x16xf32> to vector<16xf32>
    %244 = vector.shape_cast %243 : vector<16xf32> to vector<16x1xf32>
    %245 = tpu.reciprocal %244 {approx = true} : vector<16x1xf32> -> vector<16x1xf32>
    %246 = vector.broadcast %245 : vector<16x1xf32> to vector<16x16xf32>
    %247 = arith.mulf %242, %246 : vector<16x16xf32>
    %248 = arith.truncf %247 : vector<16x16xf32> to vector<16x16xbf16>
    %cst_102 = arith.constant dense<0.000000e+00> : vector<16x8xf32>
    %249 = tpu.matmul %248, %235, %cst_102 {dimension_numbers = #tpu.dot_dimension_numbers<[1], [0], [0], [1], [0, 0, 1, 1], [], []>} : vector<16x16xbf16>, vector<16x8xbf16>, vector<16x8xf32> -> vector<16x8xf32>
    %250 = vector.extract_strided_slice %198 {offsets = [0, 24], sizes = [16, 8], strides = [1, 1]} : vector<16x96xbf16> to vector<16x8xbf16>
    %251 = vector.extract_strided_slice %198 {offsets = [0, 56], sizes = [16, 8], strides = [1, 1]} : vector<16x96xbf16> to vector<16x8xbf16>
    %252 = vector.extract_strided_slice %198 {offsets = [0, 88], sizes = [16, 8], strides = [1, 1]} : vector<16x96xbf16> to vector<16x8xbf16>
    "tpu.trace_start"() <{level = 10 : i32, message = "qd,kd->qk"}> : () -> ()
    %cst_103 = arith.constant dense<0.000000e+00> : vector<16x16xf32>
    %253 = tpu.matmul %250, %251, %cst_103 {dimension_numbers = #tpu.dot_dimension_numbers<[1], [1], [0], [0], [0, 0, 1, 0], [], []>} : vector<16x8xbf16>, vector<16x8xbf16>, vector<16x16xf32> -> vector<16x16xf32>
    "tpu.trace_stop"() : () -> ()
    %254 = arith.addf %253, %5 : vector<16x16xf32>
    %cst_104 = arith.constant dense<0xFF800000> : vector<16xf32>
    %255 = vector.multi_reduction <maximumf>, %254, %cst_104 [1] : vector<16x16xf32> to vector<16xf32>
    %256 = vector.shape_cast %255 : vector<16xf32> to vector<16x1xf32>
    %257 = vector.broadcast %256 : vector<16x1xf32> to vector<16x16xf32>
    %258 = arith.subf %254, %257 : vector<16x16xf32>
    %259 = math.exp %258 : vector<16x16xf32>
    %cst_105 = arith.constant dense<0.000000e+00> : vector<16xf32>
    %260 = vector.multi_reduction <add>, %259, %cst_105 [1] : vector<16x16xf32> to vector<16xf32>
    %261 = vector.shape_cast %260 : vector<16xf32> to vector<16x1xf32>
    %262 = tpu.reciprocal %261 {approx = true} : vector<16x1xf32> -> vector<16x1xf32>
    %263 = vector.broadcast %262 : vector<16x1xf32> to vector<16x16xf32>
    %264 = arith.mulf %259, %263 : vector<16x16xf32>
    %265 = arith.truncf %264 : vector<16x16xf32> to vector<16x16xbf16>
    %cst_106 = arith.constant dense<0.000000e+00> : vector<16x8xf32>
    %266 = tpu.matmul %265, %252, %cst_106 {dimension_numbers = #tpu.dot_dimension_numbers<[1], [0], [0], [1], [0, 0, 1, 1], [], []>} : vector<16x16xbf16>, vector<16x8xbf16>, vector<16x8xf32> -> vector<16x8xf32>
    %267 = tpu.concatenate %215, %232, %249, %266 in 1 : vector<16x8xf32>, vector<16x8xf32>, vector<16x8xf32>, vector<16x8xf32> -> vector<16x32xf32>
    %268 = arith.truncf %267 : vector<16x32xf32> to vector<16x32xbf16>
    %c1_107 = arith.constant 1 : index
    %c0_108 = arith.constant 0 : index
    %c0_109 = arith.constant 0 : index
    %269 = vector.load %arg6[%c1_107, %c0_108, %c0_109] : memref<2x32x32xbf16, #tpu.memory_space<vmem>>, vector<1x32x32xbf16>
    %270 = vector.shape_cast %269 : vector<1x32x32xbf16> to vector<32x32xbf16>
    %cst_110 = arith.constant dense<0.000000e+00> : vector<16x32xf32>
    %271 = tpu.matmul %268, %270, %cst_110 {dimension_numbers = #tpu.dot_dimension_numbers<[1], [0], [0], [1], [0, 0, 1, 1], [], []>} : vector<16x32xbf16>, vector<32x32xbf16>, vector<16x32xf32> -> vector<16x32xf32>
    %272 = arith.addf %163, %271 : vector<16x32xf32>
    %c1_111 = arith.constant 1 : index
    %c0_112 = arith.constant 0 : index
    %c0_113 = arith.constant 0 : index
    %273 = vector.load %arg7[%c1_111, %c0_112, %c0_113] : memref<2x1x32xf32, #tpu.memory_space<vmem>>, vector<1x1x32xf32>
    %274 = vector.shape_cast %273 : vector<1x1x32xf32> to vector<1x32xf32>
    %275 = vector.broadcast %274 : vector<1x32xf32> to vector<16x32xf32>
    %276 = arith.addf %272, %275 : vector<16x32xf32>
    %c1_114 = arith.constant 1 : index
    %c0_115 = arith.constant 0 : index
    %c0_116 = arith.constant 0 : index
    %277 = vector.load %arg14[%c1_114, %c0_115, %c0_116] : memref<2x1x32xf32, #tpu.memory_space<vmem>>, vector<1x1x32xf32>
    %278 = vector.shape_cast %277 : vector<1x1x32xf32> to vector<1x32xf32>
    %c1_117 = arith.constant 1 : index
    %c0_118 = arith.constant 0 : index
    %c0_119 = arith.constant 0 : index
    %279 = vector.load %arg15[%c1_117, %c0_118, %c0_119] : memref<2x1x32xf32, #tpu.memory_space<vmem>>, vector<1x1x32xf32>
    %280 = vector.shape_cast %279 : vector<1x1x32xf32> to vector<1x32xf32>
    %cst_120 = arith.constant dense<0.000000e+00> : vector<16xf32>
    %281 = vector.multi_reduction <add>, %276, %cst_120 [1] : vector<16x32xf32> to vector<16xf32>
    %282 = vector.shape_cast %281 : vector<16xf32> to vector<16x1xf32>
    %cst_121 = arith.constant 3.200000e+01 : f32
    %283 = vector.broadcast %cst_121 : f32 to vector<16x1xf32>
    %284 = arith.divf %282, %283 : vector<16x1xf32>
    %285 = vector.broadcast %284 : vector<16x1xf32> to vector<16x32xf32>
    %286 = arith.subf %276, %285 : vector<16x32xf32>
    %287 = arith.mulf %286, %286 : vector<16x32xf32>
    %cst_122 = arith.constant dense<0.000000e+00> : vector<16xf32>
    %288 = vector.multi_reduction <add>, %287, %cst_122 [1] : vector<16x32xf32> to vector<16xf32>
    %289 = vector.shape_cast %288 : vector<16xf32> to vector<16x1xf32>
    %cst_123 = arith.constant 0.0322580636 : f32
    %290 = vector.broadcast %cst_123 : f32 to vector<16x1xf32>
    %291 = arith.mulf %289, %290 : vector<16x1xf32>
    %292 = vector.broadcast %284 : vector<16x1xf32> to vector<16x32xf32>
    %293 = arith.subf %276, %292 : vector<16x32xf32>
    %294 = vector.broadcast %278 : vector<1x32xf32> to vector<16x32xf32>
    %295 = arith.mulf %294, %293 : vector<16x32xf32>
    %296 = math.sqrt %291 : vector<16x1xf32>
    %cst_124 = arith.constant 9.99999997E-7 : f32
    %297 = vector.broadcast %cst_124 : f32 to vector<16x1xf32>
    %298 = arith.addf %296, %297 : vector<16x1xf32>
    %299 = vector.broadcast %298 : vector<16x1xf32> to vector<16x32xf32>
    %300 = arith.divf %295, %299 : vector<16x32xf32>
    %301 = vector.broadcast %280 : vector<1x32xf32> to vector<16x32xf32>
    %302 = arith.addf %300, %301 : vector<16x32xf32>
    %303 = arith.truncf %302 : vector<16x32xf32> to vector<16x32xbf16>
    %c1_125 = arith.constant 1 : index
    %c0_126 = arith.constant 0 : index
    %c0_127 = arith.constant 0 : index
    %304 = vector.load %arg10[%c1_125, %c0_126, %c0_127] : memref<2x32x64xbf16, #tpu.memory_space<vmem>>, vector<1x32x64xbf16>
    %305 = vector.shape_cast %304 : vector<1x32x64xbf16> to vector<32x64xbf16>
    %cst_128 = arith.constant dense<0.000000e+00> : vector<16x64xf32>
    %306 = tpu.matmul %303, %305, %cst_128 {dimension_numbers = #tpu.dot_dimension_numbers<[1], [0], [0], [1], [0, 0, 1, 1], [], []>} : vector<16x32xbf16>, vector<32x64xbf16>, vector<16x64xf32> -> vector<16x64xf32>
    %c1_129 = arith.constant 1 : index
    %c0_130 = arith.constant 0 : index
    %c0_131 = arith.constant 0 : index
    %307 = vector.load %arg11[%c1_129, %c0_130, %c0_131] : memref<2x1x64xf32, #tpu.memory_space<vmem>>, vector<1x1x64xf32>
    %308 = vector.shape_cast %307 : vector<1x1x64xf32> to vector<1x64xf32>
    %309 = vector.broadcast %308 : vector<1x64xf32> to vector<16x64xf32>
    %310 = arith.addf %306, %309 : vector<16x64xf32>
    %cst_132 = arith.constant 0.000000e+00 : f32
    %311 = vector.broadcast %cst_132 : f32 to vector<16x64xf32>
    %312 = arith.maximumf %310, %311 : vector<16x64xf32>
    %313 = arith.truncf %312 : vector<16x64xf32> to vector<16x64xbf16>
    %c1_133 = arith.constant 1 : index
    %c0_134 = arith.constant 0 : index
    %c0_135 = arith.constant 0 : index
    %314 = vector.load %arg12[%c1_133, %c0_134, %c0_135] : memref<2x64x32xbf16, #tpu.memory_space<vmem>>, vector<1x64x32xbf16>
    %315 = vector.shape_cast %314 : vector<1x64x32xbf16> to vector<64x32xbf16>
    %cst_136 = arith.constant dense<0.000000e+00> : vector<16x32xf32>
    %316 = tpu.matmul %313, %315, %cst_136 {dimension_numbers = #tpu.dot_dimension_numbers<[1], [0], [0], [1], [0, 0, 1, 1], [], []>} : vector<16x64xbf16>, vector<64x32xbf16>, vector<16x32xf32> -> vector<16x32xf32>
    %317 = arith.addf %276, %316 : vector<16x32xf32>
    %c1_137 = arith.constant 1 : index
    %c0_138 = arith.constant 0 : index
    %c0_139 = arith.constant 0 : index
    %318 = vector.load %arg13[%c1_137, %c0_138, %c0_139] : memref<2x1x32xf32, #tpu.memory_space<vmem>>, vector<1x1x32xf32>
    %319 = vector.shape_cast %318 : vector<1x1x32xf32> to vector<1x32xf32>
    %320 = vector.broadcast %319 : vector<1x32xf32> to vector<16x32xf32>
    %321 = arith.addf %317, %320 : vector<16x32xf32>
    %c0_140 = arith.constant 0 : index
    %c0_141 = arith.constant 0 : index
    %322 = vector.load %arg16[%c0_140, %c0_141] : memref<1x32xf32, #tpu.memory_space<vmem>>, vector<1x32xf32>
    %c0_142 = arith.constant 0 : index
    %c0_143 = arith.constant 0 : index
    %323 = vector.load %arg17[%c0_142, %c0_143] : memref<1x32xf32, #tpu.memory_space<vmem>>, vector<1x32xf32>
    %cst_144 = arith.constant dense<0.000000e+00> : vector<16xf32>
    %324 = vector.multi_reduction <add>, %321, %cst_144 [1] : vector<16x32xf32> to vector<16xf32>
    %325 = vector.shape_cast %324 : vector<16xf32> to vector<16x1xf32>
    %cst_145 = arith.constant 3.200000e+01 : f32
    %326 = vector.broadcast %cst_145 : f32 to vector<16x1xf32>
    %327 = arith.divf %325, %326 : vector<16x1xf32>
    %328 = vector.broadcast %327 : vector<16x1xf32> to vector<16x32xf32>
    %329 = arith.subf %321, %328 : vector<16x32xf32>
    %330 = arith.mulf %329, %329 : vector<16x32xf32>
    %cst_146 = arith.constant dense<0.000000e+00> : vector<16xf32>
    %331 = vector.multi_reduction <add>, %330, %cst_146 [1] : vector<16x32xf32> to vector<16xf32>
    %332 = vector.shape_cast %331 : vector<16xf32> to vector<16x1xf32>
    %cst_147 = arith.constant 0.0322580636 : f32
    %333 = vector.broadcast %cst_147 : f32 to vector<16x1xf32>
    %334 = arith.mulf %332, %333 : vector<16x1xf32>
    %335 = vector.broadcast %327 : vector<16x1xf32> to vector<16x32xf32>
    %336 = arith.subf %321, %335 : vector<16x32xf32>
    %337 = vector.broadcast %322 : vector<1x32xf32> to vector<16x32xf32>
    %338 = arith.mulf %337, %336 : vector<16x32xf32>
    %339 = math.sqrt %334 : vector<16x1xf32>
    %cst_148 = arith.constant 9.99999997E-7 : f32
    %340 = vector.broadcast %cst_148 : f32 to vector<16x1xf32>
    %341 = arith.addf %339, %340 : vector<16x1xf32>
    %342 = vector.broadcast %341 : vector<16x1xf32> to vector<16x32xf32>
    %343 = arith.divf %338, %342 : vector<16x32xf32>
    %344 = vector.broadcast %323 : vector<1x32xf32> to vector<16x32xf32>
    %345 = arith.addf %343, %344 : vector<16x32xf32>
    %c0_149 = arith.constant 0 : index
    %c0_150 = arith.constant 0 : index
    %346 = vector.load %arg18[%c0_149, %c0_150] : memref<16x32xf32, #tpu.memory_space<vmem>>, vector<16x32xf32>
    tpu.vector_store %arg18[%c0_149, %c0_150], %345 {strides = array<i32>} : memref<16x32xf32, #tpu.memory_space<vmem>>, vector<16x32xf32>,
    return
  }
}

</mosaic_0001>

<bundles_post_ra>
// kernel: ne.12
= control target key start
LH: loop header
LB: loop body
LE: loop exit
PB: predicated region body
PF: predicated region fallthrough
CT: control target
= control target key end

     0   :  { %vm7_vm0 = vcmask 64512   ;;  %vm13_vm1 = vcmask 130112   ;;  %s39_s0 = inlined_call_operand.vmem [shape: s32[2,8], index: 0, kind: input, shape index: {}]   ;;  %s40_s1 = inlined_call_operand.vmem [shape: s32[16], index: 1, kind: output, shape index: {}]  }
   0x1   :  { %v4_v0 = vld [vmem:[%s39_s0] sm:$0x3]  ;;  %s22_s0 = smov 8  }
   0x2   :  { %5 = vst [vmem:[#allocation1] sm:$0x3] %v4_v0 }
   0x9   :  { %v10_v1 = vld [vmem:[#allocation1 + $0x1] sm:$0x1]   ;;  %v6_v2 = vld [vmem:[#allocation1] sm:$0x1]  }
   0xa   :  { %11 = vrot.lane.b32.xlu0 %v10_v1, %s22_s0  ;;  %8 = vst.msk [vmem:[#allocation0] sm:$0x1] %vm7_vm0, %v6_v2  }
  0x7c   :  { %v12_v3 = vpop.permute.xlu0 %11  }
  0x7d   :  { %14 = vst.msk [vmem:[#allocation0] sm:$0x1] %vm13_vm1, %v12_v3  }
  0x84   :  { %v18_v4 = vld [vmem:[#allocation0] sm:$0x1] }
  0x85   :  { %20 = vst [vmem:[%s40_s1] sm:$0x1] %v18_v4 }

// kernel: attention_model_forward.1
= control target key start
LH: loop header
LB: loop body
LE: loop exit
PB: predicated region body
PF: predicated region fallthrough
CT: control target
= control target key end

     0   :  { %s3161_s0 = inlined_call_operand.vmem [shape: bf16[16,16], index: 0, kind: input, shape index: {}]   ;;  %s3162_s1 = inlined_call_operand.vmem [shape: f32[16,16], index: 1, kind: input, shape index: {}]   ;;  %s3163_s2 = inlined_call_operand.vmem [shape: bf16[16,32], index: 2, kind: input, shape index: {}]   ;;  %s3164_s3 = inlined_call_operand.vmem [shape: f32[16,32], index: 3, kind: input, shape index: {}]   ;;  %s3165_s4 = inlined_call_operand.vmem [shape: bf16[2,32,96], index: 4, kind: input, shape index: {}]   ;;  %s3166_s5 = inlined_call_operand.vmem [shape: f32[2,1,96], index: 5, kind: input, shape index: {}]   ;;  %s3167_s6 = inlined_call_operand.vmem [shape: bf16[2,32,32], index: 6, kind: input, shape index: {}]   ;;  %s3168_s7 = inlined_call_operand.vmem [shape: f32[2,1,32], index: 7, kind: input, shape index: {}]   ;;  %s3169_s8 = inlined_call_operand.vmem [shape: f32[2,1,32], index: 8, kind: input, shape index: {}]   ;;  %s3170_s9 = inlined_call_operand.vmem [shape: f32[2,1,32], index: 9, kind: input, shape index: {}]   ;;  %s3171_s10 = inlined_call_operand.vmem [shape: bf16[2,32,64], index: 10, kind: input, shape index: {}]   ;;  %s3172_s11 = inlined_call_operand.vmem [shape: f32[2,1,64], index: 11, kind: input, shape index: {}]   ;;  %s3173_s12 = inlined_call_operand.vmem [shape: bf16[2,64,32], index: 12, kind: input, shape index: {}]   ;;  %s3174_s13 = inlined_call_operand.vmem [shape: f32[2,1,32], index: 13, kind: input, shape index: {}]   ;;  %s3175_s14 = inlined_call_operand.vmem [shape: f32[2,1,32], index: 14, kind: input, shape index: {}]   ;;  %s3176_s15 = inlined_call_operand.vmem [shape: f32[2,1,32], index: 15, kind: input, shape index: {}]   ;;  %s3177_s16 = inlined_call_operand.vmem [shape: f32[1,32], index: 16, kind: input, shape index: {}]   ;;  %s3178_s17 = inlined_call_operand.vmem [shape: f32[1,32], index: 17, kind: input, shape index: {}]   ;;  %s3179_s18 = inlined_call_operand.hbm [shape: f32[16,32], index: 18, kind: output, shape index: {}]  }
   0x1   :  { %3188 = sst [smem:[#allocation5_spill]] %s3161_s0 }
   0x2   :  { %3189 = sst [smem:[#allocation6_spill]] %s3162_s1 }
   0x3   :  { %3190 = sst [smem:[#allocation7_spill]] %s3163_s2 }
   0x4   :  { %s3191_s29 = sld [smem:[#allocation7_spill]]  ;;  %v2601_v1 = vmov 0.0   ;;  %s3192_s19 = sld [smem:[#allocation5_spill]]  ;;  %vm2602_vm0 = vmmov 0   ;;  %vm78_vm1 = vcmask 130048  }
   0x5   :  { %2229 = vmatprep.subr.bf16.mxu0 %v2601_v1  ;;  %2249 = vmatprep.subr.bf16.mxu1 %v2601_v1 }
   0x6   :  { %2231 = vmatprep.mubr.msk.bf16.mxu0 %vm2602_vm0, %v2601_v1  ;;  %2251 = vmatprep.mubr.msk.bf16.mxu1 %vm2602_vm0, %v2601_v1 }
   0xa   :  { %v2451_v0 = vld [vmem:[%s3191_s29] sm:$0xff]  }
   0xb   :  { %v2452_v2 = vld [vmem:[%s3192_s19] sm:$0xff]   ;;  %2230 = vmatpush3.bf16.msra.mxu0 %v2451_v0 }
   0xc   :  { %2235 = vmatprep.subr.bf16.mxu0 %v2601_v1 }
   0xe   :  { %2232 = vmatmul.mubr.msk.bf16.vlgmr.msra.gmra.mrb[0].mxu0 %vm78_vm1, %v2452_v2 }
   0xf   :  { %2239 = vmatprep.mubr.msk.bf16.mxu0 %vm2602_vm0, %v2601_v1 }
  0x10   :  { %23 = vsyncpa [#allocation3], 0  ;;  %v65_v3 = vld [vmem:[%s3164_s3] sm:$0xff]  ;;  %v66_v5 = vld [vmem:[%s3164_s3 + $0x8] sm:$0xff]  ;;  %vm127_vm2 = vcmask 261120   ;;  %s2603_s0 = smov 88  }
  0x11   :  { %v2453_v23 = vld [vmem:[%s3165_s4] sm:$0xff]   ;;  %v2454_v24 = vld [vmem:[%s3165_s4 + $0x8] sm:$0xff]   ;;  %s2604_s19 = smov 96   ;;  %s2605_s1 = smov 120   ;;  %vm257_vm7 = vcmask 64512   ;;  %vm766_vm8 = vcmask 195584  }
  0x12   :  { %2236 = vmatpush3.bf16.msra.mxu0 %v2453_v23  ;;  %v2077_v41 = vld [vmem:[%s3169_s8] ss:$0 sm:$0xff]  ;;  %s2606_s20 = smov 112   ;;  %s2607_s21 = smov 80   ;;  %vm1002_vm13 = vcmask 523264  }
  0x13   :  { %2237 = vmatprep.subr.bf16.mxu0 %v2601_v1  ;;  %v2078_v47 = vld [vmem:[%s3170_s9] ss:$0 sm:$0xff]  ;;  %s2608_s22 = smov 104   ;;  %s2609_s3 = smov 72  }
  0x14   :  { %v2079_v52 = vld [vmem:[%s3166_s5] ss:$0 sm:$0xff]  ;;  %s3193_s24 = sld [smem:[#allocation6_spill]]  ;;  %s2610_s27 = smov 64  }
  0x15   :  { %s3187_s28 = smov 48   ;;  %s3186_s29 = smov 40  }
  0x16   :  { %2238 = vmatpush3.bf16.msra.mxu0 %v2454_v24  ;;  %s3185_s30 = smov 56   ;;  %s3182_s2 = smov 16  }
  0x17   :  { %2243 = vmatprep.subr.bf16.mxu0 %v2601_v1  ;;  %s3181_s23 = smov 24  }
  0xe1   :  { %v116_v4 = vpop.f32.mrb[0].mxu0 }
  0xe2   :  { %v2736_v6 = vadd.f32 %v116_v4, %v65_v3  ;;  %v2233_v7 = vpop.f32.mrb[1].mxu0 }
  0xe3   :  { %v119_v8 = vpop.f32.mrb[2].mxu0 }
  0xe4   :  { %v2738_v9 = vadd.f32 %v119_v8, %v66_v5  ;;  %v2234_v10 = vpop.f32.mrb[3].mxu0  ;;  %v128_v11 = vsel %vm127_vm2, %v2736_v6, 0.0 }
  0xe5   :  { %129 = vadd.xlane.f32.xlu0 %v128_v11  ;;  %v2808_v10 = vld [vmem:[%s3193_s24] sm:$0xff] }
  0xe6   :  { %v131_v12 = vsel %vm127_vm2, %v2738_v9, 0.0 }
  0xe9   :  { %132 = vadd.xlane.f32.xlu0 %v131_v12  ;;  %v2813_v12 = vld [vmem:[%s3193_s24 + $0x8] sm:$0xff]  ;;  %s3183_s24 = smov 8  }
 0x172   :  { %v130_v13 = vpop.xlane.xlu0 %129 }
 0x173   :  { %v135_v14 = vmul.f32 0.03125, %v130_v13 }
 0x175   :  { %v137_v15 = vsub.f32 %v2736_v6, %v135_v14 }
 0x176   :  { %v133_v16 = vpop.xlane.xlu0 %132 }
 0x177   :  { %v136_v17 = vmul.f32 0.03125, %v133_v16  ;;  %v139_v18 = vmul.f32 %v137_v15, %v137_v15  ;;  %v155_v43 = vmul.f32 %v2077_v41, %v137_v15 }
 0x179   :  { %v138_v19 = vsub.f32 %v2738_v9, %v136_v17  ;;  %v141_v20 = vsel %vm127_vm2, %v139_v18, 0.0 }
 0x17a   :  { %142 = vadd.xlane.f32.xlu1 %v141_v20 }
 0x17b   :  { %v140_v21 = vmul.f32 %v138_v19, %v138_v19  ;;  %v156_v44 = vmul.f32 %v2077_v41, %v138_v19 }
 0x17d   :  { %v144_v22 = vsel %vm127_vm2, %v140_v21, 0.0 }
 0x17e   :  { %145 = vadd.xlane.f32.xlu1 %v144_v22 }
 0x207   :  { %v143_v25 = vpop.xlane.xlu1 %142 }
 0x208   :  { %v147_v26 = vmul.f32 0.032258064, %v143_v25 }
 0x20a   :  { %2473 = vrsqrt.f32 %v147_v26  ;;  %vm159_vm3 = vcmp.eq.f32.partialorder %v147_v26, inf  ;;  %v162_v31 = vand.u32 2147483648, %v147_v26  ;;  %vm161_vm4 = vcmp.eq.f32.partialorder %v147_v26, 0.0 }
 0x20b   :  { %v146_v27 = vpop.xlane.xlu1 %145 }
 0x20c   :  { %v148_v28 = vmul.f32 0.032258064, %v146_v27 }
 0x20e   :  { %2475 = vrsqrt.f32 %v148_v28  ;;  %vm166_vm5 = vcmp.eq.f32.partialorder %v148_v28, inf  ;;  %v169_v37 = vand.u32 2147483648, %v148_v28  ;;  %vm168_vm6 = vcmp.eq.f32.partialorder %v148_v28, 0.0 }
 0x214   :  { %v2474_v29 = vpop.eup %2473 }
 0x215   :  { %v158_v30 = vmul.f32 %v2474_v29, %v147_v26 }
 0x217   :  { %v160_v32 = vsel %vm159_vm3, %v147_v26, %v158_v30 }
 0x218   :  { %v2476_v33 = vpop.eup %2475  ;;  %v163_v34 = vsel %vm161_vm4, %v162_v31, %v160_v32 }
 0x219   :  { %v171_v35 = vadd.f32 1e-06, %v163_v34  ;;  %v165_v36 = vmul.f32 %v2476_v33, %v148_v28 }
 0x21b   :  { %2477 = vrcp.f32 %v171_v35  ;;  %v167_v38 = vsel %vm166_vm5, %v148_v28, %v165_v36 }
 0x21c   :  { %v170_v39 = vsel %vm168_vm6, %v169_v37, %v167_v38 }
 0x21d   :  { %v172_v40 = vadd.f32 1e-06, %v170_v39 }
 0x21f   :  { %2479 = vrcp.f32 %v172_v40 }
 0x225   :  { %v2478_v42 = vpop.eup %2477 }
 0x226   :  { %v174_v45 = vmul.f32 %v2478_v42, %v155_v43 }
 0x228   :  { %v183_v49 = vadd.f32 %v2078_v47, %v174_v45 }
 0x229   :  { %v2480_v46 = vpop.eup %2479 }
 0x22a   :  { %v176_v48 = vmul.f32 %v2480_v46, %v156_v44 }
 0x22c   :  { %v184_v50 = vadd.f32 %v2078_v47, %v176_v48 }
 0x22e   :  { %v185_v51 = vpack.c.bf16 %v184_v50, %v183_v49 }
 0x230   :  { %2240 = vmatmul.mubr.msk.bf16.vlgmr.msra.gmra.mrb[4].mxu0 %vm127_vm2, %v185_v51 }
 0x231   :  { %2245 = vmatprep.mubr.msk.bf16.mxu0 %vm2602_vm0, %v2601_v1 }
 0x303   :  { %v246_v53 = vpop.f32.mrb[4].mxu0 }
 0x304   :  { %v2241_v54 = vpop.f32.mrb[5].mxu0  ;;  %v247_v56 = vadd.f32 %v2079_v52, %v246_v53 }
 0x305   :  { %v249_v55 = vpop.f32.mrb[6].mxu0 }
 0x306   :  { %v250_v57 = vadd.f32 %v2079_v52, %v249_v55  ;;  %v2242_v58 = vpop.f32.mrb[7].mxu0 }
 0x308   :  { %v2768_v59 = vpack.c.bf16 %v250_v57, %v247_v56 }
 0x30a   :  { %377 = vrot.lane.b32.xlu1 %v2768_v59, %s2603_s0  ;;  %255 = vrot.lane.b32.xlu0 %v2768_v59, %s2604_s19 }
 0x30e   :  { %375 = vrot.lane.b32.xlu1 %v2768_v59, %s2605_s1  ;;  %496 = vrot.lane.b32.xlu0 %v2768_v59, %s2606_s20 }
 0x312   :  { %498 = vrot.lane.b32.xlu1 %v2768_v59, %s2607_s21  ;;  %617 = vrot.lane.b32.xlu0 %v2768_v59, %s2608_s22 }
 0x316   :  { %619 = vrot.lane.b32.xlu1 %v2768_v59, %s2609_s3 }
 0x37c   :  { %v256_v60 = vpop.permute.xlu0 %255  ;;  %v378_v62 = vpop.permute.xlu1 %377 }
 0x37d   :  { %v262_v61 = vsel %vm257_vm7, %v256_v60, 0  ;;  %v383_v0 = vsel %vm257_vm7, %v378_v62, 0 }
 0x37e   :  { %2244 = vmatpush3.bf16.xpose.msra.mxu0 %v262_v61 }
 0x37f   :  { %2255 = vmatprep.subr.bf16.mxu0 %v2601_v1 }
 0x380   :  { %v376_v63 = vpop.permute.xlu1 %375  ;;  %v497_v5 = vpop.permute.xlu0 %496 }
 0x384   :  { %v499_v2 = vpop.permute.xlu1 %498  ;;  %v618_v8 = vpop.permute.xlu0 %617 }
 0x385   :  { %2246 = vmatmul.mubr.msk.bf16.vlgmr.msra.gmra.mrb[8].mxu0 %vm257_vm7, %v2768_v59  ;;  %v504_v3 = vsel %vm257_vm7, %v499_v2, 0 }
 0x386   :  { %2256 = vmatpush3.bf16.xpose.msra.mxu0 %v383_v0  ;;  %2257 = vmatprep.mubr.msk.bf16.mxu0 %vm2602_vm0, %v2601_v1 }
 0x387   :  { %2267 = vmatprep.subr.bf16.mxu0 %v2601_v1 }
 0x388   :  { %v620_v4 = vpop.permute.xlu1 %619 }
 0x389   :  { %v625_v7 = vsel %vm257_vm7, %v620_v4, 0 }
 0x38d   :  { %2258 = vmatmul.mubr.msk.bf16.vlgmr.msra.gmra.mrb[12].mxu0 %vm257_vm7, %v376_v63 }
 0x38e   :  { %2268 = vmatpush3.bf16.xpose.msra.mxu0 %v504_v3  ;;  %2269 = vmatprep.mubr.msk.bf16.mxu0 %vm2602_vm0, %v2601_v1 }
 0x38f   :  { %2279 = vmatprep.subr.bf16.mxu0 %v2601_v1 }
 0x395   :  { %2270 = vmatmul.mubr.msk.bf16.vlgmr.msra.gmra.mrb[16].mxu0 %vm257_vm7, %v497_v5 }
 0x396   :  { %2280 = vmatpush3.bf16.xpose.msra.mxu0 %v625_v7  ;;  %2281 = vmatprep.mubr.msk.bf16.mxu0 %vm2602_vm0, %v2601_v1 }
 0x397   :  { %2291 = vmatprep.subr.bf16.mxu0 %v2601_v1 }
 0x39d   :  { %2282 = vmatmul.mubr.msk.bf16.vlgmr.msra.gmra.mrb[20].mxu0 %vm257_vm7, %v618_v8 }
 0x39e   :  { %2295 = vmatprep.mubr.msk.bf16.mxu0 %vm2602_vm0, %v2601_v1 }
 0x458   :  { %v298_v11 = vpop.f32.mrb[8].mxu0 }
 0x459   :  { %v299_v13 = vadd.f32 %v298_v11, %v2808_v10  ;;  %v2247_v14 = vpop.f32.mrb[9].mxu0 }
 0x45a   :  { %v301_v15 = vpop.f32.mrb[10].mxu0 }
 0x45b   :  { %v302_v16 = vadd.f32 %v301_v15, %v2813_v12  ;;  %v2248_v17 = vpop.f32.mrb[11].mxu0  ;;  %v305_v18 = vsel %vm78_vm1, %v299_v13, -inf }
 0x45c   :  { %306 = vmax.xlane.f32.xlu1 %v305_v18 }
 0x45d   :  { %v308_v19 = vsel %vm78_vm1, %v302_v16, -inf }
 0x45e   :  { %309 = vmax.xlane.f32.xlu0 %v308_v19 }
 0x460   :  { %v419_v20 = vpop.f32.mrb[12].mxu0 }
 0x461   :  { %v420_v21 = vadd.f32 %v419_v20, %v2808_v10  ;;  %v2259_v22 = vpop.f32.mrb[13].mxu0 }
 0x462   :  { %v422_v23 = vpop.f32.mrb[14].mxu0 }
 0x463   :  { %v423_v24 = vadd.f32 %v422_v23, %v2813_v12  ;;  %v2260_v25 = vpop.f32.mrb[15].mxu0  ;;  %v426_v26 = vsel %vm78_vm1, %v420_v21, -inf }
 0x464   :  { %427 = vmax.xlane.f32.xlu0 %v426_v26 }
 0x465   :  { %v429_v27 = vsel %vm78_vm1, %v423_v24, -inf }
 0x468   :  { %430 = vmax.xlane.f32.xlu0 %v429_v27  ;;  %v540_v28 = vpop.f32.mrb[16].mxu0 }
 0x469   :  { %v541_v29 = vadd.f32 %v540_v28, %v2808_v10  ;;  %v2271_v30 = vpop.f32.mrb[17].mxu0 }
 0x46a   :  { %v543_v31 = vpop.f32.mrb[18].mxu0 }
 0x46b   :  { %v544_v32 = vadd.f32 %v543_v31, %v2813_v12  ;;  %v2272_v33 = vpop.f32.mrb[19].mxu0  ;;  %v547_v34 = vsel %vm78_vm1, %v541_v29, -inf }
 0x46c   :  { %548 = vmax.xlane.f32.xlu1 %v547_v34 }
 0x46d   :  { %v550_v35 = vsel %vm78_vm1, %v544_v32, -inf }
 0x46e   :  { %551 = vmax.xlane.f32.xlu0 %v550_v35 }
 0x470   :  { %v661_v36 = vpop.f32.mrb[20].mxu0 }
 0x471   :  { %v662_v37 = vadd.f32 %v661_v36, %v2808_v10  ;;  %v2283_v38 = vpop.f32.mrb[21].mxu0 }
 0x472   :  { %v664_v39 = vpop.f32.mrb[22].mxu0 }
 0x473   :  { %v665_v40 = vadd.f32 %v664_v39, %v2813_v12  ;;  %v2284_v41 = vpop.f32.mrb[23].mxu0  ;;  %v668_v42 = vsel %vm78_vm1, %v662_v37, -inf }
 0x474   :  { %669 = vmax.xlane.f32.xlu1 %v668_v42 }
 0x475   :  { %v671_v43 = vsel %vm78_vm1, %v665_v40, -inf }
 0x476   :  { %672 = vmax.xlane.f32.xlu0 %v671_v43 }
 0x485   :  { %328 = vrot.lane.b32.xlu1 %v2768_v59, %s2610_s27 }
 0x4e9   :  { %v307_v44 = vpop.xlane.xlu1 %306 }
 0x4ea   :  { %v311_v45 = vsub.f32 %v299_v13, %v307_v44 }
 0x4eb   :  { %v310_v46 = vpop.xlane.xlu0 %309 }
 0x4ec   :  { %v313_v47 = vmul.f32 1.442695, %v311_v45  ;;  %v312_v48 = vsub.f32 %v302_v16, %v310_v46 }
 0x4ee   :  { %2481 = vpow2.f32 %v313_v47  ;;  %v315_v49 = vmul.f32 1.442695, %v312_v48 }
 0x4f0   :  { %2483 = vpow2.f32 %v315_v49 }
 0x4f1   :  { %v428_v50 = vpop.xlane.xlu0 %427 }
 0x4f2   :  { %v432_v51 = vsub.f32 %v420_v21, %v428_v50 }
 0x4f4   :  { %v434_v52 = vmul.f32 1.442695, %v432_v51 }
 0x4f5   :  { %v431_v53 = vpop.xlane.xlu0 %430 }
 0x4f6   :  { %2485 = vpow2.f32 %v434_v52  ;;  %v433_v54 = vsub.f32 %v423_v24, %v431_v53 }
 0x4f8   :  { %v2482_v55 = vpop.eup %2481  ;;  %v436_v56 = vmul.f32 1.442695, %v433_v54 }
 0x4f9   :  { %v549_v57 = vpop.xlane.xlu1 %548  ;;  %v317_v58 = vsel %vm78_vm1, %v2482_v55, 0.0 }
 0x4fa   :  { %v2484_v60 = vpop.eup %2483  ;;  %2487 = vpow2.f32 %v436_v56  ;;  %v553_v61 = vsub.f32 %v541_v29, %v549_v57  ;;  %318 = vadd.xlane.f32.xlu1 %v317_v58 }
 0x4fb   :  { %v552_v62 = vpop.xlane.xlu0 %551  ;;  %v320_v63 = vsel %vm78_vm1, %v2484_v60, 0.0 }
 0x4fc   :  { %v555_v0 = vmul.f32 1.442695, %v553_v61  ;;  %v554_v2 = vsub.f32 %v544_v32, %v552_v62  ;;  %321 = vadd.xlane.f32.xlu0 %v320_v63 }
 0x4fe   :  { %2489 = vpow2.f32 %v555_v0  ;;  %v557_v3 = vmul.f32 1.442695, %v554_v2  ;;  %v2455_v2 = vld [vmem:[%s3167_s6] sm:$0xff]  }
 0x4ff   :  { %2292 = vmatpush3.bf16.msra.mxu0 %v2455_v2 }
 0x500   :  { %v2486_v4 = vpop.eup %2485  ;;  %2491 = vpow2.f32 %v557_v3  ;;  %2293 = vmatprep.subr.bf16.mxu0 %v2601_v1 }
 0x501   :  { %v670_v5 = vpop.xlane.xlu1 %669  ;;  %v438_v7 = vsel %vm78_vm1, %v2486_v4, 0.0 }
 0x502   :  { %v674_v8 = vsub.f32 %v662_v37, %v670_v5  ;;  %439 = vadd.xlane.f32.xlu1 %v438_v7 }
 0x503   :  { %v673_v11 = vpop.xlane.xlu0 %672 }
 0x504   :  { %v2488_v13 = vpop.eup %2487  ;;  %v676_v14 = vmul.f32 1.442695, %v674_v8  ;;  %v675_v15 = vsub.f32 %v665_v40, %v673_v11  ;;  %v2456_v8 = vld [vmem:[%s3167_s6 + $0x8] sm:$0xff]  }
 0x505   :  { %v329_v16 = vpop.permute.xlu1 %328  ;;  %v441_v17 = vsel %vm78_vm1, %v2488_v13, 0.0  ;;  %2294 = vmatpush3.bf16.msra.mxu0 %v2456_v8 }
 0x506   :  { %2493 = vpow2.f32 %v676_v14  ;;  %v678_v18 = vmul.f32 1.442695, %v675_v15  ;;  %2250 = vmatpush3.bf16.msra.mxu1 %v329_v16  ;;  %442 = vadd.xlane.f32.xlu0 %v441_v17 }
 0x507   :  { %2261 = vmatprep.subr.bf16.mxu1 %v2601_v1  ;;  %2307 = vmatprep.subr.bf16.mxu0 %v2601_v1 }
 0x508   :  { %v2490_v19 = vpop.eup %2489  ;;  %2495 = vpow2.f32 %v678_v18 }
 0x509   :  { %v559_v20 = vsel %vm78_vm1, %v2490_v19, 0.0 }
 0x50a   :  { %v2492_v21 = vpop.eup %2491  ;;  %560 = vadd.xlane.f32.xlu1 %v559_v20 }
 0x50b   :  { %v562_v22 = vsel %vm78_vm1, %v2492_v21, 0.0 }
 0x50c   :  { %563 = vadd.xlane.f32.xlu0 %v562_v22 }
 0x510   :  { %v2494_v23 = vpop.eup %2493 }
 0x511   :  { %v680_v24 = vsel %vm78_vm1, %v2494_v23, 0.0 }
 0x512   :  { %v2496_v25 = vpop.eup %2495  ;;  %681 = vadd.xlane.f32.xlu1 %v680_v24 }
 0x513   :  { %v683_v26 = vsel %vm78_vm1, %v2496_v25, 0.0 }
 0x514   :  { %684 = vadd.xlane.f32.xlu0 %v683_v26 }
 0x523   :  { %570 = vrot.lane.b32.xlu1 %v2768_v59, %s3187_s28 }
 0x527   :  { %691 = vrot.lane.b32.xlu1 %v2768_v59, %s3186_s29 }
 0x52a   :  { %449 = vrot.lane.b32.xlu0 %v2768_v59, %s3185_s30 }
 0x587   :  { %v319_v27 = vpop.xlane.xlu1 %318 }
 0x588   :  { %2497 = vrcp.f32 %v319_v27 }
 0x589   :  { %v322_v28 = vpop.xlane.xlu0 %321 }
 0x58a   :  { %2499 = vrcp.f32 %v322_v28 }
 0x58f   :  { %v440_v32 = vpop.xlane.xlu1 %439 }
 0x592   :  { %v2498_v29 = vpop.eup %2497 }
 0x593   :  { %v443_v30 = vpop.xlane.xlu0 %442  ;;  %v325_v33 = vmul.f32 %v2498_v29, %v2482_v55 }
 0x594   :  { %v2500_v31 = vpop.eup %2499  ;;  %2501 = vrcp.f32 %v443_v30 }
 0x595   :  { %v326_v34 = vmul.f32 %v2500_v31, %v2484_v60  ;;  %2503 = vrcp.f32 %v440_v32 }
 0x597   :  { %v327_v35 = vpack.c.bf16 %v326_v34, %v325_v33  ;;  %v561_v59 = vpop.xlane.xlu1 %560 }
 0x599   :  { %2252 = vmatmul.mubr.msk.bf16.vlgmr.msra.gmra.mrb[0].mxu1 %vm78_vm1, %v327_v35  ;;  %v564_v36 = vpop.xlane.xlu0 %563 }
 0x59a   :  { %2263 = vmatprep.mubr.msk.bf16.mxu1 %vm2602_vm0, %v2601_v1  ;;  %2505 = vrcp.f32 %v564_v36 }
 0x59b   :  { %2507 = vrcp.f32 %v561_v59  ;;  %v2094_v59 = vld [vmem:[%s3168_s7] ss:$0 sm:$0xff] }
 0x59e   :  { %v2502_v37 = vpop.eup %2501 }
 0x59f   :  { %v2504_v39 = vpop.eup %2503  ;;  %v447_v40 = vmul.f32 %v2502_v37, %v2488_v13  ;;  %v682_v41 = vpop.xlane.xlu1 %681 }
 0x5a0   :  { %v446_v42 = vmul.f32 %v2504_v39, %v2486_v4 }
 0x5a1   :  { %v685_v38 = vpop.xlane.xlu0 %684 }
 0x5a2   :  { %2509 = vrcp.f32 %v685_v38  ;;  %v448_v44 = vpack.c.bf16 %v447_v40, %v446_v42 }
 0x5a3   :  { %2511 = vrcp.f32 %v682_v41  ;;  %v571_v46 = vpop.permute.xlu1 %570 }
 0x5a4   :  { %v2506_v45 = vpop.eup %2505 }
 0x5a5   :  { %v450_v43 = vpop.permute.xlu0 %449  ;;  %v2508_v47 = vpop.eup %2507  ;;  %v568_v48 = vmul.f32 %v2506_v45, %v2492_v21 }
 0x5a6   :  { %2262 = vmatpush3.bf16.msra.mxu1 %v450_v43  ;;  %v567_v49 = vmul.f32 %v2508_v47, %v2490_v19 }
 0x5a7   :  { %2273 = vmatprep.subr.bf16.mxu1 %v2601_v1  ;;  %v692_v52 = vpop.permute.xlu1 %691 }
 0x5a8   :  { %v569_v50 = vpack.c.bf16 %v568_v48, %v567_v49 }
 0x5a9   :  { %2264 = vmatmul.mubr.msk.bf16.vlgmr.msra.gmra.mrb[4].mxu1 %vm78_vm1, %v448_v44 }
 0x5aa   :  { %2274 = vmatpush3.bf16.msra.mxu1 %v571_v46  ;;  %2275 = vmatprep.mubr.msk.bf16.mxu1 %vm2602_vm0, %v2601_v1 }
 0x5ab   :  { %2285 = vmatprep.subr.bf16.mxu1 %v2601_v1 }
 0x5ac   :  { %v2510_v51 = vpop.eup %2509 }
 0x5ad   :  { %v2512_v53 = vpop.eup %2511  ;;  %v689_v54 = vmul.f32 %v2510_v51, %v2496_v25 }
 0x5ae   :  { %v688_v55 = vmul.f32 %v2512_v53, %v2494_v23 }
 0x5b0   :  { %v690_v56 = vpack.c.bf16 %v689_v54, %v688_v55  ;;  %v2457_v54 = vld [vmem:[%s3171_s10] sm:$0xff]   ;;  %v2458_v55 = vld [vmem:[%s3171_s10 + $0x8] sm:$0xff]  }
 0x5b1   :  { %2276 = vmatmul.mubr.msk.bf16.vlgmr.msra.gmra.mrb[8].mxu1 %vm78_vm1, %v569_v50 }
 0x5b2   :  { %2286 = vmatpush3.bf16.msra.mxu1 %v692_v52  ;;  %2287 = vmatprep.mubr.msk.bf16.mxu1 %vm2602_vm0, %v2601_v1 }
 0x5b3   :  { %2299 = vmatprep.subr.bf16.mxu1 %v2601_v1 }
 0x5b9   :  { %2288 = vmatmul.mubr.msk.bf16.vlgmr.msra.gmra.mrb[12].mxu1 %vm78_vm1, %v690_v56  ;;  %v2459_v56 = vld [vmem:[%s3173_s12] sm:$0xff]  }
 0x5ba   :  { %2303 = vmatprep.mubr.msk.bf16.mxu1 %vm2602_vm0, %v2601_v1  ;;  %2300 = vmatpush3.bf16.msra.mxu1 %v2457_v54 }
 0x5bb   :  { %2301 = vmatprep.subr.bf16.mxu1 %v2601_v1 }
 0x5be   :  { %2302 = vmatpush3.bf16.msra.mxu1 %v2458_v55 }
 0x5bf   :  { %2319 = vmatprep.subr.bf16.mxu1 %v2601_v1 }
 0x66c   :  { %v368_v57 = vpop.f32.mrb[0].mxu1 }
 0x66d   :  { %v2253_v58 = vpop.f32.mrb[1].mxu1 }
 0x66e   :  { %v371_v60 = vpop.f32.mrb[2].mxu1 }
 0x66f   :  { %v2254_v61 = vpop.f32.mrb[3].mxu1 }
 0x67c   :  { %v489_v62 = vpop.f32.mrb[4].mxu1 }
 0x67d   :  { %v2265_v63 = vpop.f32.mrb[5].mxu1 }
 0x67e   :  { %v492_v0 = vpop.f32.mrb[6].mxu1 }
 0x67f   :  { %v2421_v3 = vpack.i.bf16 %v492_v0, %v489_v62  ;;  %v2266_v4 = vpop.f32.mrb[7].mxu1 }
 0x681   :  { %2422 = vrot.lane.b32.xlu1 %v2421_v3, %s3183_s24 }
 0x684   :  { %v610_v5 = vpop.f32.mrb[8].mxu1 }
 0x685   :  { %v2277_v7 = vpop.f32.mrb[9].mxu1 }
 0x686   :  { %v613_v11 = vpop.f32.mrb[10].mxu1 }
 0x687   :  { %v2426_v13 = vpack.i.bf16 %v613_v11, %v610_v5  ;;  %v2278_v14 = vpop.f32.mrb[11].mxu1 }
 0x689   :  { %2427 = vrot.lane.b32.xlu0 %v2426_v13, %s3182_s2 }
 0x68c   :  { %v731_v15 = vpop.f32.mrb[12].mxu1 }
 0x68d   :  { %v2289_v16 = vpop.f32.mrb[13].mxu1 }
 0x68e   :  { %v734_v17 = vpop.f32.mrb[14].mxu1  ;;  %v2095_v16 = vld [vmem:[%s3175_s14] ss:$0 sm:$0xff] }
 0x68f   :  { %v2431_v18 = vpack.i.bf16 %v734_v17, %v731_v15  ;;  %v2290_v19 = vpop.f32.mrb[15].mxu1 }
 0x691   :  { %2432 = vrot.lane.b32.xlu1 %v2431_v18, %s3181_s23 }
 0x6f3   :  { %v2423_v20 = vpop.permute.xlu1 %2422 }
 0x6f4   :  { %v2425_v22 = vunpack.i.h.bf16 %v2423_v20  ;;  %v2424_v23 = vunpack.i.l.bf16 %v2423_v20 }
 0x6f6   :  { %v763_v27 = vsel %vm257_vm7, %v371_v60, %v2425_v22  ;;  %v762_v28 = vsel %vm257_vm7, %v368_v57, %v2424_v23  ;;  %v2460_v57 = vld [vmem:[%s3173_s12 + $0x8] sm:$0xff]   ;;  %v2096_v22 = vld [vmem:[%s3176_s15] ss:$0 sm:$0xff] }
 0x6fb   :  { %v2428_v21 = vpop.permute.xlu0 %2427 }
 0x6fc   :  { %v2430_v24 = vunpack.i.h.bf16 %v2428_v21  ;;  %v2429_v25 = vunpack.i.l.bf16 %v2428_v21 }
 0x6fe   :  { %v765_v31 = vsel %vm78_vm1, %v763_v27, %v2430_v24  ;;  %v764_v32 = vsel %vm78_vm1, %v762_v28, %v2429_v25  ;;  %v2461_v27 = vld [vmem:[%s3173_s12 + $0x10] sm:$0xff]   ;;  %v2462_v28 = vld [vmem:[%s3173_s12 + $0x18] sm:$0xff]  }
 0x703   :  { %v2433_v26 = vpop.permute.xlu1 %2432 }
 0x704   :  { %v2435_v29 = vunpack.i.h.bf16 %v2433_v26  ;;  %v2434_v30 = vunpack.i.l.bf16 %v2433_v26 }
 0x706   :  { %v768_v33 = vsel %vm766_vm8, %v765_v31, %v2435_v29  ;;  %v767_v34 = vsel %vm766_vm8, %v764_v32, %v2434_v30  ;;  %v2097_v29 = vld [vmem:[%s3172_s11] ss:$0 sm:$0xff] }
 0x707   :  { %v769_v35 = vpack.c.bf16 %v768_v33, %v767_v34 }
 0x709   :  { %2296 = vmatmul.mubr.msk.bf16.vlgmr.msra.gmra.mrb[24].mxu0 %vm127_vm2, %v769_v35 }
 0x70a   :  { %2315 = vmatprep.mubr.msk.bf16.mxu0 %vm2602_vm0, %v2601_v1  ;;  %2308 = vmatpush3.bf16.msra.mxu0 %v2459_v56 }
 0x70b   :  { %2309 = vmatprep.subr.bf16.mxu0 %v2601_v1 }
 0x70e   :  { %2310 = vmatpush3.bf16.msra.mxu0 %v2460_v57  ;;  %v2463_v57 = vld [vmem:[%s3165_s4 + $0x10] sm:$0xff]  }
 0x70f   :  { %2311 = vmatprep.subr.bf16.mxu0 %v2601_v1 }
 0x712   :  { %2312 = vmatpush3.bf16.msra.mxu0 %v2461_v27 }
 0x713   :  { %2313 = vmatprep.subr.bf16.mxu0 %v2601_v1 }
 0x716   :  { %2314 = vmatpush3.bf16.msra.mxu0 %v2462_v28  ;;  %v2116_v28 = vld [vmem:[%s3166_s5 + $0x1] ss:$0 sm:$0xff]  ;;  %s3194_s5 = smov 48  }
 0x717   :  { %2333 = vmatprep.subr.bf16.mxu0 %v2601_v1 }
 0x7dc   :  { %v823_v36 = vpop.f32.mrb[24].mxu0 }
 0x7dd   :  { %v830_v37 = vadd.f32 %v823_v36, %v2736_v6  ;;  %v2297_v38 = vpop.f32.mrb[25].mxu0 }
 0x7de   :  { %v826_v39 = vpop.f32.mrb[26].mxu0 }
 0x7df   :  { %v2887_v40 = vadd.f32 %v2094_v59, %v830_v37  ;;  %v831_v41 = vadd.f32 %v826_v39, %v2738_v9  ;;  %v2298_v42 = vpop.f32.mrb[27].mxu0  ;;  %v2106_v39 = vld [vmem:[%s3174_s13] ss:$0 sm:$0xff] }
 0x7e1   :  { %v2890_v43 = vadd.f32 %v2094_v59, %v831_v41  ;;  %v843_v44 = vsel %vm127_vm2, %v2887_v40, 0.0 }
 0x7e2   :  { %844 = vadd.xlane.f32.xlu0 %v843_v44 }
 0x7e3   :  { %v846_v45 = vsel %vm127_vm2, %v2890_v43, 0.0 }
 0x7e4   :  { %847 = vadd.xlane.f32.xlu1 %v846_v45 }
 0x86f   :  { %v845_v46 = vpop.xlane.xlu0 %844 }
 0x870   :  { %v849_v47 = vmul.f32 0.03125, %v845_v46 }
 0x871   :  { %v848_v6 = vpop.xlane.xlu1 %847 }
 0x872   :  { %v851_v48 = vsub.f32 %v2887_v40, %v849_v47  ;;  %v850_v49 = vmul.f32 0.03125, %v848_v6 }
 0x874   :  { %v852_v50 = vsub.f32 %v2890_v43, %v850_v49  ;;  %v853_v9 = vmul.f32 %v851_v48, %v851_v48  ;;  %v869_v18 = vmul.f32 %v2095_v16, %v851_v48 }
 0x876   :  { %v855_v51 = vsel %vm127_vm2, %v853_v9, 0.0  ;;  %v854_v52 = vmul.f32 %v852_v50, %v852_v50  ;;  %v870_v19 = vmul.f32 %v2095_v16, %v852_v50 }
 0x877   :  { %856 = vadd.xlane.f32.xlu0 %v855_v51 }
 0x878   :  { %v858_v53 = vsel %vm127_vm2, %v854_v52, 0.0 }
 0x87b   :  { %859 = vadd.xlane.f32.xlu0 %v858_v53 }
 0x904   :  { %v857_v58 = vpop.xlane.xlu0 %856 }
 0x905   :  { %v861_v60 = vmul.f32 0.032258064, %v857_v58  ;;  %v2464_v58 = vld [vmem:[%s3165_s4 + $0x18] sm:$0xff]  }
 0x907   :  { %2513 = vrsqrt.f32 %v861_v60  ;;  %vm873_vm9 = vcmp.eq.f32.partialorder %v861_v60, inf  ;;  %v876_v2 = vand.u32 2147483648, %v861_v60  ;;  %vm875_vm10 = vcmp.eq.f32.partialorder %v861_v60, 0.0 }
 0x908   :  { %v860_v61 = vpop.xlane.xlu0 %859 }
 0x909   :  { %v862_v62 = vmul.f32 0.032258064, %v860_v61 }
 0x90b   :  { %2515 = vrsqrt.f32 %v862_v62  ;;  %vm880_vm11 = vcmp.eq.f32.partialorder %v862_v62, inf  ;;  %v883_v11 = vand.u32 2147483648, %v862_v62  ;;  %vm882_vm12 = vcmp.eq.f32.partialorder %v862_v62, 0.0 }
 0x911   :  { %v2514_v63 = vpop.eup %2513 }
 0x912   :  { %v872_v0 = vmul.f32 %v2514_v63, %v861_v60 }
 0x914   :  { %v874_v3 = vsel %vm873_vm9, %v861_v60, %v872_v0 }
 0x915   :  { %v2516_v4 = vpop.eup %2515  ;;  %v877_v5 = vsel %vm875_vm10, %v876_v2, %v874_v3 }
 0x916   :  { %v885_v7 = vadd.f32 1e-06, %v877_v5  ;;  %v879_v8 = vmul.f32 %v2516_v4, %v862_v62 }
 0x918   :  { %2517 = vrcp.f32 %v885_v7  ;;  %v881_v13 = vsel %vm880_vm11, %v862_v62, %v879_v8 }
 0x919   :  { %v884_v14 = vsel %vm882_vm12, %v883_v11, %v881_v13 }
 0x91a   :  { %v886_v15 = vadd.f32 1e-06, %v884_v14 }
 0x91c   :  { %2519 = vrcp.f32 %v886_v15 }
 0x922   :  { %v2518_v17 = vpop.eup %2517 }
 0x923   :  { %v888_v20 = vmul.f32 %v2518_v17, %v869_v18  ;;  %v2109_v17 = vld [vmem:[%s3169_s8 + $0x1] ss:$0 sm:$0xff] }
 0x925   :  { %v897_v24 = vadd.f32 %v2096_v22, %v888_v20 }
 0x926   :  { %v2520_v21 = vpop.eup %2519 }
 0x927   :  { %v890_v23 = vmul.f32 %v2520_v21, %v870_v19 }
 0x929   :  { %v898_v25 = vadd.f32 %v2096_v22, %v890_v23  ;;  %v2110_v23 = vld [vmem:[%s3170_s9 + $0x1] ss:$0 sm:$0xff]  ;;  %s3195_s9 = smov 40  }
 0x92b   :  { %v899_v26 = vpack.c.bf16 %v898_v25, %v897_v24 }
 0x92d   :  { %2304 = vmatmul.mubr.msk.bf16.vlgmr.msra.gmra.mrb[16].mxu1 %vm127_vm2, %v899_v26 }
 0x92e   :  { %2323 = vmatprep.mubr.msk.bf16.mxu1 %vm2602_vm0, %v2601_v1  ;;  %2320 = vmatpush3.bf16.msra.mxu1 %v2463_v57 }
 0x92f   :  { %2321 = vmatprep.subr.bf16.mxu1 %v2601_v1 }
 0x932   :  { %2322 = vmatpush3.bf16.msra.mxu1 %v2464_v58 }
 0x933   :  { %2327 = vmatprep.subr.bf16.mxu1 %v2601_v1 }
 0xa00   :  { %v960_v30 = vpop.f32.mrb[16].mxu1 }
 0xa01   :  { %v961_v31 = vadd.f32 %v2097_v29, %v960_v30  ;;  %v2305_v32 = vpop.f32.mrb[17].mxu1 }
 0xa02   :  { %v963_v33 = vpop.f32.mrb[18].mxu1 }
 0xa03   :  { %v964_v34 = vadd.f32 %v2097_v29, %v963_v33  ;;  %v2306_v35 = vpop.f32.mrb[19].mxu1  ;;  %v967_v36 = vmax.f32 %v961_v31, 0.0 }
 0xa05   :  { %v968_v59 = vmax.f32 %v964_v34, 0.0 }
 0xa07   :  { %v969_v37 = vpack.c.bf16 %v968_v59, %v967_v36 }
 0xa09   :  { %2316 = vmatmul.mubr.msk.bf16.vlgmr.msra.gmra.mrb[28].mxu0 %vm1002_vm13, %v969_v37 }
 0xa0a   :  { %2335 = vmatprep.mubr.msk.bf16.mxu0 %vm2602_vm0, %v2601_v1 }
 0xadc   :  { %v1040_v38 = vpop.f32.mrb[28].mxu0 }
 0xadd   :  { %v1047_v41 = vadd.f32 %v1040_v38, %v2887_v40  ;;  %v2317_v42 = vpop.f32.mrb[29].mxu0 }
 0xade   :  { %v1043_v44 = vpop.f32.mrb[30].mxu0 }
 0xadf   :  { %v2943_v45 = vadd.f32 %v2106_v39, %v1047_v41  ;;  %v1048_v46 = vadd.f32 %v1043_v44, %v2890_v43  ;;  %v2318_v47 = vpop.f32.mrb[31].mxu0 }
 0xae1   :  { %v2946_v6 = vadd.f32 %v2106_v39, %v1048_v46  ;;  %v1062_v48 = vsel %vm127_vm2, %v2943_v45, 0.0 }
 0xae2   :  { %1063 = vadd.xlane.f32.xlu0 %v1062_v48 }
 0xae3   :  { %v1065_v49 = vsel %vm127_vm2, %v2946_v6, 0.0 }
 0xae4   :  { %1066 = vadd.xlane.f32.xlu1 %v1065_v49 }
 0xb6f   :  { %v1064_v50 = vpop.xlane.xlu0 %1063 }
 0xb70   :  { %v1068_v9 = vmul.f32 0.03125, %v1064_v50 }
 0xb71   :  { %v1067_v40 = vpop.xlane.xlu1 %1066 }
 0xb72   :  { %v1070_v51 = vsub.f32 %v2943_v45, %v1068_v9  ;;  %v1069_v52 = vmul.f32 0.03125, %v1067_v40 }
 0xb74   :  { %v1071_v53 = vsub.f32 %v2946_v6, %v1069_v52  ;;  %v1072_v43 = vmul.f32 %v1070_v51, %v1070_v51  ;;  %v1088_v19 = vmul.f32 %v2109_v17, %v1070_v51 }
 0xb76   :  { %v1074_v54 = vsel %vm127_vm2, %v1072_v43, 0.0  ;;  %v1073_v55 = vmul.f32 %v1071_v53, %v1071_v53  ;;  %v1089_v20 = vmul.f32 %v2109_v17, %v1071_v53 }
 0xb77   :  { %1075 = vadd.xlane.f32.xlu0 %v1074_v54 }
 0xb78   :  { %v1077_v56 = vsel %vm127_vm2, %v1073_v55, 0.0 }
 0xb79   :  { %1078 = vadd.xlane.f32.xlu1 %v1077_v56 }
 0xc04   :  { %v1076_v60 = vpop.xlane.xlu0 %1075 }
 0xc05   :  { %v1080_v61 = vmul.f32 0.032258064, %v1076_v60 }
 0xc06   :  { %v1079_v62 = vpop.xlane.xlu1 %1078 }
 0xc07   :  { %2521 = vrsqrt.f32 %v1080_v61  ;;  %v1081_v63 = vmul.f32 0.032258064, %v1079_v62  ;;  %vm1092_vm14 = vcmp.eq.f32.partialorder %v1080_v61, inf  ;;  %v1095_v3 = vand.u32 2147483648, %v1080_v61 }
 0xc08   :  { %vm1094_vm15 = vcmp.eq.f32.partialorder %v1080_v61, 0.0 }
 0xc09   :  { %2523 = vrsqrt.f32 %v1081_v63  ;;  %vm1099_vm3 = vcmp.eq.f32.partialorder %v1081_v63, inf  ;;  %v1102_v13 = vand.u32 2147483648, %v1081_v63  ;;  %vm1101_vm4 = vcmp.eq.f32.partialorder %v1081_v63, 0.0 }
 0xc11   :  { %v2522_v0 = vpop.eup %2521 }
 0xc12   :  { %v1091_v2 = vmul.f32 %v2522_v0, %v1080_v61 }
 0xc13   :  { %v2524_v4 = vpop.eup %2523 }
 0xc14   :  { %v1093_v5 = vsel %vm1092_vm14, %v1080_v61, %v1091_v2  ;;  %v1098_v8 = vmul.f32 %v2524_v4, %v1081_v63 }
 0xc15   :  { %v1096_v7 = vsel %vm1094_vm15, %v1095_v3, %v1093_v5 }
 0xc16   :  { %v1104_v11 = vadd.f32 1e-06, %v1096_v7  ;;  %v1100_v14 = vsel %vm1099_vm3, %v1081_v63, %v1098_v8 }
 0xc17   :  { %v1103_v15 = vsel %vm1101_vm4, %v1102_v13, %v1100_v14 }
 0xc18   :  { %2525 = vrcp.f32 %v1104_v11  ;;  %v1105_v16 = vadd.f32 1e-06, %v1103_v15 }
 0xc1a   :  { %2527 = vrcp.f32 %v1105_v16 }
 0xc22   :  { %v2526_v18 = vpop.eup %2525 }
 0xc23   :  { %v1107_v21 = vmul.f32 %v2526_v18, %v1088_v19 }
 0xc24   :  { %v2528_v22 = vpop.eup %2527 }
 0xc25   :  { %v1109_v24 = vmul.f32 %v2528_v22, %v1089_v20  ;;  %v1116_v25 = vadd.f32 %v2110_v23, %v1107_v21 }
 0xc27   :  { %v1117_v26 = vadd.f32 %v2110_v23, %v1109_v24 }
 0xc29   :  { %v1118_v27 = vpack.c.bf16 %v1117_v26, %v1116_v25 }
 0xc2b   :  { %2324 = vmatmul.mubr.msk.bf16.vlgmr.msra.gmra.mrb[20].mxu1 %vm127_vm2, %v1118_v27 }
 0xc2c   :  { %2329 = vmatprep.mubr.msk.bf16.mxu1 %vm2602_vm0, %v2601_v1 }
 0xcfe   :  { %v1181_v29 = vpop.f32.mrb[20].mxu1 }
 0xcff   :  { %v2325_v30 = vpop.f32.mrb[21].mxu1  ;;  %v1182_v32 = vadd.f32 %v2116_v28, %v1181_v29 }
 0xd00   :  { %v1184_v31 = vpop.f32.mrb[22].mxu1 }
 0xd01   :  { %v1185_v33 = vadd.f32 %v2116_v28, %v1184_v31  ;;  %v2326_v34 = vpop.f32.mrb[23].mxu1 }
 0xd03   :  { %v2976_v35 = vpack.c.bf16 %v1185_v33, %v1182_v32 }
 0xd05   :  { %1311 = vrot.lane.b32.xlu1 %v2976_v35, %s2603_s0  ;;  %1190 = vrot.lane.b32.xlu0 %v2976_v35, %s2604_s19  ;;  %s3196_s0 = smov 56  }
 0xd09   :  { %1309 = vrot.lane.b32.xlu1 %v2976_v35, %s2605_s1  ;;  %1430 = vrot.lane.b32.xlu0 %v2976_v35, %s2606_s20  ;;  %s3197_s20 = smov 8  }
 0xd0d   :  { %1432 = vrot.lane.b32.xlu1 %v2976_v35, %s2607_s21  ;;  %1551 = vrot.lane.b32.xlu0 %v2976_v35, %s2608_s22 }
 0xd11   :  { %1553 = vrot.lane.b32.xlu1 %v2976_v35, %s2609_s3  ;;  %s3198_s3 = smov 16  }
 0xd77   :  { %v1191_v36 = vpop.permute.xlu0 %1190  ;;  %v1312_v37 = vpop.permute.xlu1 %1311 }
 0xd78   :  { %v1196_v59 = vsel %vm257_vm7, %v1191_v36, 0  ;;  %v1317_v39 = vsel %vm257_vm7, %v1312_v37, 0 }
 0xd79   :  { %2328 = vmatpush3.bf16.xpose.msra.mxu1 %v1196_v59 }
 0xd7a   :  { %2339 = vmatprep.subr.bf16.mxu1 %v2601_v1 }
 0xd7b   :  { %v1310_v38 = vpop.permute.xlu1 %1309  ;;  %v1431_v46 = vpop.permute.xlu0 %1430 }
 0xd7f   :  { %v1433_v41 = vpop.permute.xlu1 %1432  ;;  %v1552_v48 = vpop.permute.xlu0 %1551 }
 0xd80   :  { %2330 = vmatmul.mubr.msk.bf16.vlgmr.msra.gmra.mrb[24].mxu1 %vm257_vm7, %v2976_v35  ;;  %v1438_v42 = vsel %vm257_vm7, %v1433_v41, 0 }
 0xd81   :  { %2340 = vmatpush3.bf16.xpose.msra.mxu1 %v1317_v39  ;;  %2341 = vmatprep.mubr.msk.bf16.mxu1 %vm2602_vm0, %v2601_v1 }
 0xd82   :  { %2351 = vmatprep.subr.bf16.mxu1 %v2601_v1 }
 0xd83   :  { %v1554_v44 = vpop.permute.xlu1 %1553 }
 0xd84   :  { %v1559_v47 = vsel %vm257_vm7, %v1554_v44, 0 }
 0xd88   :  { %2342 = vmatmul.mubr.msk.bf16.vlgmr.msra.gmra.mrb[28].mxu1 %vm257_vm7, %v1310_v38 }
 0xd89   :  { %2352 = vmatpush3.bf16.xpose.msra.mxu1 %v1438_v42  ;;  %2353 = vmatprep.mubr.msk.bf16.mxu1 %vm2602_vm0, %v2601_v1 }
 0xd8a   :  { %2363 = vmatprep.subr.bf16.mxu1 %v2601_v1 }
 0xd90   :  { %2354 = vmatmul.mubr.msk.bf16.vlgmr.msra.gmra.mrb[32].mxu1 %vm257_vm7, %v1431_v46 }
 0xd91   :  { %2364 = vmatpush3.bf16.xpose.msra.mxu1 %v1559_v47  ;;  %2365 = vmatprep.mubr.msk.bf16.mxu1 %vm2602_vm0, %v2601_v1 }
 0xd92   :  { %2375 = vmatprep.subr.bf16.mxu1 %v2601_v1 }
 0xd98   :  { %2366 = vmatmul.mubr.msk.bf16.vlgmr.msra.gmra.mrb[36].mxu1 %vm257_vm7, %v1552_v48 }
 0xd99   :  { %2379 = vmatprep.mubr.msk.bf16.mxu1 %vm2602_vm0, %v2601_v1 }
 0xe53   :  { %v1232_v49 = vpop.f32.mrb[24].mxu1 }
 0xe54   :  { %v1233_v50 = vadd.f32 %v1232_v49, %v2808_v10  ;;  %v2331_v9 = vpop.f32.mrb[25].mxu1 }
 0xe55   :  { %v1235_v40 = vpop.f32.mrb[26].mxu1 }
 0xe56   :  { %v1236_v51 = vadd.f32 %v1235_v40, %v2813_v12  ;;  %v2332_v52 = vpop.f32.mrb[27].mxu1  ;;  %v1239_v53 = vsel %vm78_vm1, %v1233_v50, -inf }
 0xe57   :  { %1240 = vmax.xlane.f32.xlu1 %v1239_v53 }
 0xe58   :  { %v1242_v43 = vsel %vm78_vm1, %v1236_v51, -inf }
 0xe59   :  { %1243 = vmax.xlane.f32.xlu0 %v1242_v43 }
 0xe5b   :  { %v1353_v54 = vpop.f32.mrb[28].mxu1 }
 0xe5c   :  { %v1354_v55 = vadd.f32 %v1353_v54, %v2808_v10  ;;  %v2343_v56 = vpop.f32.mrb[29].mxu1 }
 0xe5d   :  { %v1356_v57 = vpop.f32.mrb[30].mxu1 }
 0xe5e   :  { %v1357_v58 = vadd.f32 %v1356_v57, %v2813_v12  ;;  %v2344_v60 = vpop.f32.mrb[31].mxu1  ;;  %v1360_v61 = vsel %vm78_vm1, %v1354_v55, -inf }
 0xe5f   :  { %1361 = vmax.xlane.f32.xlu0 %v1360_v61 }
 0xe60   :  { %v1363_v62 = vsel %vm78_vm1, %v1357_v58, -inf }
 0xe63   :  { %1364 = vmax.xlane.f32.xlu0 %v1363_v62  ;;  %v1474_v63 = vpop.f32.mrb[32].mxu1 }
 0xe64   :  { %v1475_v0 = vadd.f32 %v1474_v63, %v2808_v10  ;;  %v2355_v2 = vpop.f32.mrb[33].mxu1 }
 0xe65   :  { %v1477_v3 = vpop.f32.mrb[34].mxu1 }
 0xe66   :  { %v1478_v4 = vadd.f32 %v1477_v3, %v2813_v12  ;;  %v2356_v5 = vpop.f32.mrb[35].mxu1  ;;  %v1481_v7 = vsel %vm78_vm1, %v1475_v0, -inf }
 0xe67   :  { %1482 = vmax.xlane.f32.xlu1 %v1481_v7 }
 0xe68   :  { %v1484_v8 = vsel %vm78_vm1, %v1478_v4, -inf }
 0xe69   :  { %1485 = vmax.xlane.f32.xlu0 %v1484_v8 }
 0xe6b   :  { %v1595_v11 = vpop.f32.mrb[36].mxu1 }
 0xe6c   :  { %v1596_v13 = vadd.f32 %v1595_v11, %v2808_v10  ;;  %v2367_v14 = vpop.f32.mrb[37].mxu1 }
 0xe6d   :  { %v1598_v15 = vpop.f32.mrb[38].mxu1 }
 0xe6e   :  { %v1599_v16 = vadd.f32 %v1598_v15, %v2813_v12  ;;  %v2368_v17 = vpop.f32.mrb[39].mxu1  ;;  %v1602_v18 = vsel %vm78_vm1, %v1596_v13, -inf }
 0xe6f   :  { %1603 = vmax.xlane.f32.xlu1 %v1602_v18 }
 0xe70   :  { %v1605_v19 = vsel %vm78_vm1, %v1599_v16, -inf }
 0xe71   :  { %1606 = vmax.xlane.f32.xlu0 %v1605_v19 }
 0xe80   :  { %1262 = vrot.lane.b32.xlu1 %v2976_v35, %s2610_s27  ;;  %s3199_s27 = smov 24  }
 0xee4   :  { %v1241_v20 = vpop.xlane.xlu1 %1240 }
 0xee5   :  { %v1245_v21 = vsub.f32 %v1233_v50, %v1241_v20 }
 0xee6   :  { %v1244_v22 = vpop.xlane.xlu0 %1243 }
 0xee7   :  { %v1247_v23 = vmul.f32 1.442695, %v1245_v21  ;;  %v1246_v24 = vsub.f32 %v1236_v51, %v1244_v22 }
 0xee9   :  { %2529 = vpow2.f32 %v1247_v23  ;;  %v1249_v10 = vmul.f32 1.442695, %v1246_v24 }
 0xeeb   :  { %2531 = vpow2.f32 %v1249_v10 }
 0xeec   :  { %v1362_v25 = vpop.xlane.xlu0 %1361 }
 0xeed   :  { %v1366_v12 = vsub.f32 %v1354_v55, %v1362_v25 }
 0xeef   :  { %v1368_v26 = vmul.f32 1.442695, %v1366_v12 }
 0xef0   :  { %v1365_v27 = vpop.xlane.xlu0 %1364 }
 0xef1   :  { %2533 = vpow2.f32 %v1368_v26  ;;  %v1367_v28 = vsub.f32 %v1357_v58, %v1365_v27 }
 0xef3   :  { %v2530_v29 = vpop.eup %2529  ;;  %v1370_v30 = vmul.f32 1.442695, %v1367_v28 }
 0xef4   :  { %v1483_v31 = vpop.xlane.xlu1 %1482  ;;  %v1251_v32 = vsel %vm78_vm1, %v2530_v29, 0.0 }
 0xef5   :  { %v2532_v33 = vpop.eup %2531  ;;  %2535 = vpow2.f32 %v1370_v30  ;;  %v1487_v34 = vsub.f32 %v1475_v0, %v1483_v31  ;;  %1252 = vadd.xlane.f32.xlu1 %v1251_v32 }
 0xef6   :  { %v1486_v36 = vpop.xlane.xlu0 %1485  ;;  %v1254_v59 = vsel %vm78_vm1, %v2532_v33, 0.0 }
 0xef7   :  { %v1489_v37 = vmul.f32 1.442695, %v1487_v34  ;;  %v1488_v38 = vsub.f32 %v1478_v4, %v1486_v36  ;;  %1255 = vadd.xlane.f32.xlu0 %v1254_v59  ;;  %v2465_v59 = vld [vmem:[%s3167_s6 + $0x10] sm:$0xff]  }
 0xef8   :  { %2376 = vmatpush3.bf16.msra.mxu1 %v2465_v59 }
 0xef9   :  { %2537 = vpow2.f32 %v1489_v37  ;;  %v1491_v39 = vmul.f32 1.442695, %v1488_v38  ;;  %2377 = vmatprep.subr.bf16.mxu1 %v2601_v1 }
 0xefb   :  { %v2534_v41 = vpop.eup %2533  ;;  %2539 = vpow2.f32 %v1491_v39 }
 0xefc   :  { %v1604_v42 = vpop.xlane.xlu1 %1603  ;;  %v1372_v44 = vsel %vm78_vm1, %v2534_v41, 0.0 }
 0xefd   :  { %v1608_v46 = vsub.f32 %v1596_v13, %v1604_v42  ;;  %1373 = vadd.xlane.f32.xlu1 %v1372_v44  ;;  %v2466_v42 = vld [vmem:[%s3167_s6 + $0x18] sm:$0xff]  }
 0xefe   :  { %v1607_v47 = vpop.xlane.xlu0 %1606  ;;  %2378 = vmatpush3.bf16.msra.mxu1 %v2466_v42 }
 0xeff   :  { %v2536_v48 = vpop.eup %2535  ;;  %v1610_v49 = vmul.f32 1.442695, %v1608_v46  ;;  %v1609_v50 = vsub.f32 %v1599_v16, %v1607_v47  ;;  %2391 = vmatprep.subr.bf16.mxu1 %v2601_v1 }
 0xf00   :  { %v1263_v9 = vpop.permute.xlu1 %1262  ;;  %v1375_v40 = vsel %vm78_vm1, %v2536_v48, 0.0 }
 0xf01   :  { %2541 = vpow2.f32 %v1610_v49  ;;  %v1612_v51 = vmul.f32 1.442695, %v1609_v50  ;;  %2334 = vmatpush3.bf16.msra.mxu0 %v1263_v9  ;;  %1376 = vadd.xlane.f32.xlu0 %v1375_v40 }
 0xf02   :  { %2345 = vmatprep.subr.bf16.mxu0 %v2601_v1 }
 0xf03   :  { %v2538_v52 = vpop.eup %2537  ;;  %2543 = vpow2.f32 %v1612_v51 }
 0xf04   :  { %v1493_v53 = vsel %vm78_vm1, %v2538_v52, 0.0 }
 0xf05   :  { %v2540_v43 = vpop.eup %2539  ;;  %1494 = vadd.xlane.f32.xlu1 %v1493_v53 }
 0xf06   :  { %v1496_v54 = vsel %vm78_vm1, %v2540_v43, 0.0 }
 0xf07   :  { %1497 = vadd.xlane.f32.xlu0 %v1496_v54 }
 0xf0b   :  { %v2542_v55 = vpop.eup %2541 }
 0xf0c   :  { %v1614_v56 = vsel %vm78_vm1, %v2542_v55, 0.0 }
 0xf0d   :  { %v2544_v57 = vpop.eup %2543  ;;  %1615 = vadd.xlane.f32.xlu1 %v1614_v56 }
 0xf0e   :  { %v1617_v58 = vsel %vm78_vm1, %v2544_v57, 0.0 }
 0xf0f   :  { %1618 = vadd.xlane.f32.xlu0 %v1617_v58 }
 0xf1e   :  { %1504 = vrot.lane.b32.xlu1 %v2976_v35, %s3194_s5 }
 0xf22   :  { %1625 = vrot.lane.b32.xlu1 %v2976_v35, %s3195_s9 }
 0xf25   :  { %1383 = vrot.lane.b32.xlu0 %v2976_v35, %s3196_s0 }
 0xf82   :  { %v1253_v60 = vpop.xlane.xlu1 %1252 }
 0xf83   :  { %2545 = vrcp.f32 %v1253_v60 }
 0xf84   :  { %v1256_v61 = vpop.xlane.xlu0 %1255 }
 0xf85   :  { %2547 = vrcp.f32 %v1256_v61 }
 0xf8a   :  { %v1374_v4 = vpop.xlane.xlu1 %1373 }
 0xf8d   :  { %v2546_v62 = vpop.eup %2545 }
 0xf8e   :  { %v1377_v63 = vpop.xlane.xlu0 %1376  ;;  %v1259_v2 = vmul.f32 %v2546_v62, %v2530_v29 }
 0xf8f   :  { %v2548_v0 = vpop.eup %2547  ;;  %2549 = vrcp.f32 %v1377_v63 }
 0xf90   :  { %v1260_v3 = vmul.f32 %v2548_v0, %v2532_v33  ;;  %2551 = vrcp.f32 %v1374_v4 }
 0xf92   :  { %v1261_v5 = vpack.c.bf16 %v1260_v3, %v1259_v2  ;;  %v1495_v35 = vpop.xlane.xlu1 %1494 }
 0xf94   :  { %2336 = vmatmul.mubr.msk.bf16.vlgmr.msra.gmra.mrb[32].mxu0 %vm78_vm1, %v1261_v5  ;;  %v1498_v7 = vpop.xlane.xlu0 %1497  ;;  %v2136_v5 = vld [vmem:[%s3168_s7 + $0x1] ss:$0 sm:$0xff] }
 0xf95   :  { %2347 = vmatprep.mubr.msk.bf16.mxu0 %vm2602_vm0, %v2601_v1  ;;  %2553 = vrcp.f32 %v1498_v7 }
 0xf96   :  { %2555 = vrcp.f32 %v1495_v35 }
 0xf99   :  { %v2550_v8 = vpop.eup %2549 }
 0xf9a   :  { %v2552_v13 = vpop.eup %2551  ;;  %v1381_v14 = vmul.f32 %v2550_v8, %v2536_v48  ;;  %v1616_v15 = vpop.xlane.xlu1 %1615 }
 0xf9b   :  { %v1380_v16 = vmul.f32 %v2552_v13, %v2534_v41 }
 0xf9c   :  { %v1619_v11 = vpop.xlane.xlu0 %1618 }
 0xf9d   :  { %2557 = vrcp.f32 %v1619_v11  ;;  %v1382_v18 = vpack.c.bf16 %v1381_v14, %v1380_v16 }
 0xf9e   :  { %2559 = vrcp.f32 %v1616_v15  ;;  %v1505_v20 = vpop.permute.xlu1 %1504 }
 0xf9f   :  { %v2554_v19 = vpop.eup %2553 }
 0xfa0   :  { %v1384_v17 = vpop.permute.xlu0 %1383  ;;  %v2556_v21 = vpop.eup %2555  ;;  %v1502_v22 = vmul.f32 %v2554_v19, %v2540_v43 }
 0xfa1   :  { %2346 = vmatpush3.bf16.msra.mxu0 %v1384_v17  ;;  %v1501_v23 = vmul.f32 %v2556_v21, %v2538_v52 }
 0xfa2   :  { %2357 = vmatprep.subr.bf16.mxu0 %v2601_v1  ;;  %v1626_v25 = vpop.permute.xlu1 %1625 }
 0xfa3   :  { %v1503_v24 = vpack.c.bf16 %v1502_v22, %v1501_v23 }
 0xfa4   :  { %2348 = vmatmul.mubr.msk.bf16.vlgmr.msra.gmra.mrb[36].mxu0 %vm78_vm1, %v1382_v18 }
 0xfa5   :  { %2358 = vmatpush3.bf16.msra.mxu0 %v1505_v20  ;;  %2359 = vmatprep.mubr.msk.bf16.mxu0 %vm2602_vm0, %v2601_v1 }
 0xfa6   :  { %2369 = vmatprep.subr.bf16.mxu0 %v2601_v1 }
 0xfa7   :  { %v2558_v10 = vpop.eup %2557 }
 0xfa8   :  { %v2560_v12 = vpop.eup %2559  ;;  %v1623_v26 = vmul.f32 %v2558_v10, %v2544_v57 }
 0xfa9   :  { %v1622_v27 = vmul.f32 %v2560_v12, %v2542_v55  ;;  %v2468_v12 = vld [vmem:[%s3171_s10 + $0x18] sm:$0xff]  }
 0xfab   :  { %v1624_v28 = vpack.c.bf16 %v1623_v26, %v1622_v27  ;;  %v2469_v26 = vld [vmem:[%s3173_s12 + $0x20] sm:$0xff]   ;;  %v2470_v27 = vld [vmem:[%s3173_s12 + $0x28] sm:$0xff]  }
 0xfac   :  { %2360 = vmatmul.mubr.msk.bf16.vlgmr.msra.gmra.mrb[40].mxu0 %vm78_vm1, %v1503_v24 }
 0xfad   :  { %2370 = vmatpush3.bf16.msra.mxu0 %v1626_v25  ;;  %2371 = vmatprep.mubr.msk.bf16.mxu0 %vm2602_vm0, %v2601_v1  ;;  %v2467_v25 = vld [vmem:[%s3171_s10 + $0x10] sm:$0xff]  }
 0xfae   :  { %2383 = vmatprep.subr.bf16.mxu0 %v2601_v1 }
 0xfb4   :  { %2372 = vmatmul.mubr.msk.bf16.vlgmr.msra.gmra.mrb[44].mxu0 %vm78_vm1, %v1624_v28 }
 0xfb5   :  { %2387 = vmatprep.mubr.msk.bf16.mxu0 %vm2602_vm0, %v2601_v1  ;;  %2384 = vmatpush3.bf16.msra.mxu0 %v2467_v25 }
 0xfb6   :  { %2385 = vmatprep.subr.bf16.mxu0 %v2601_v1 }
 0xfb9   :  { %2386 = vmatpush3.bf16.msra.mxu0 %v2468_v12 }
0x1067   :  { %v1302_v29 = vpop.f32.mrb[32].mxu0 }
0x1068   :  { %v2337_v30 = vpop.f32.mrb[33].mxu0 }
0x1069   :  { %v1305_v31 = vpop.f32.mrb[34].mxu0 }
0x106a   :  { %v2338_v32 = vpop.f32.mrb[35].mxu0 }
0x1077   :  { %v1423_v33 = vpop.f32.mrb[36].mxu0 }
0x1078   :  { %v2349_v34 = vpop.f32.mrb[37].mxu0 }
0x1079   :  { %v1426_v36 = vpop.f32.mrb[38].mxu0 }
0x107a   :  { %v2436_v37 = vpack.i.bf16 %v1426_v36, %v1423_v33  ;;  %v2350_v38 = vpop.f32.mrb[39].mxu0 }
0x107c   :  { %2437 = vrot.lane.b32.xlu1 %v2436_v37, %s3197_s20 }
0x107f   :  { %v1544_v39 = vpop.f32.mrb[40].mxu0 }
0x1080   :  { %v2361_v41 = vpop.f32.mrb[41].mxu0 }
0x1081   :  { %v1547_v44 = vpop.f32.mrb[42].mxu0 }
0x1082   :  { %v2441_v46 = vpack.i.bf16 %v1547_v44, %v1544_v39  ;;  %v2362_v47 = vpop.f32.mrb[43].mxu0 }
0x1083   :  { %v2139_v47 = vld [vmem:[%s3175_s14 + $0x1] ss:$0 sm:$0xff] }
0x1084   :  { %2442 = vrot.lane.b32.xlu0 %v2441_v46, %s3198_s3 }
0x1087   :  { %v1665_v48 = vpop.f32.mrb[44].mxu0 }
0x1088   :  { %v2373_v49 = vpop.f32.mrb[45].mxu0 }
0x1089   :  { %v1668_v50 = vpop.f32.mrb[46].mxu0 }
0x108a   :  { %v2446_v9 = vpack.i.bf16 %v1668_v50, %v1665_v48  ;;  %v2374_v40 = vpop.f32.mrb[47].mxu0 }
0x108c   :  { %2447 = vrot.lane.b32.xlu1 %v2446_v9, %s3199_s27  ;;  %s2617_s27 = smov [#allocation2]  }
0x108d   :  { %s2063_s6 = sshll.u32 %s2617_s27, 4  ;;  %s2064_s6 = int_to_ptr.vmem [resolvable:$true] %s2063_s6 }
0x108e   :  { %p2582_p1 = scmp.lt.s32.totalorder %s2064_s6, %s2064_s6 }
0x10ee   :  { %v2438_v51 = vpop.permute.xlu1 %2437 }
0x10ef   :  { %v2440_v53 = vunpack.i.h.bf16 %v2438_v51  ;;  %v2439_v43 = vunpack.i.l.bf16 %v2438_v51  ;;  %v2140_v51 = vld [vmem:[%s3176_s15 + $0x1] ss:$0 sm:$0xff] }
0x10f1   :  { %v1697_v57 = vsel %vm257_vm7, %v1305_v31, %v2440_v53  ;;  %v1696_v58 = vsel %vm257_vm7, %v1302_v29, %v2439_v43 }
0x10f6   :  { %v2443_v52 = vpop.permute.xlu0 %2442 }
0x10f7   :  { %v2445_v54 = vunpack.i.h.bf16 %v2443_v52  ;;  %v2444_v55 = vunpack.i.l.bf16 %v2443_v52 }
0x10f9   :  { %v1699_v62 = vsel %vm78_vm1, %v1697_v57, %v2445_v54  ;;  %v1698_v63 = vsel %vm78_vm1, %v1696_v58, %v2444_v55  ;;  %v2471_v55 = vld [vmem:[%s3173_s12 + $0x30] sm:$0xff]   ;;  %v2146_v57 = vld [vmem:[%s3172_s11 + $0x1] ss:$0 sm:$0xff] }
0x10fe   :  { %v2448_v56 = vpop.permute.xlu1 %2447 }
0x10ff   :  { %v2450_v60 = vunpack.i.h.bf16 %v2448_v56  ;;  %v2449_v61 = vunpack.i.l.bf16 %v2448_v56  ;;  %v2472_v56 = vld [vmem:[%s3173_s12 + $0x38] sm:$0xff]  }
0x1101   :  { %v1701_v0 = vsel %vm766_vm8, %v1699_v62, %v2450_v60  ;;  %v1700_v2 = vsel %vm766_vm8, %v1698_v63, %v2449_v61 }
0x1102   :  { %v1702_v3 = vpack.c.bf16 %v1701_v0, %v1700_v2 }
0x1104   :  { %2380 = vmatmul.mubr.msk.bf16.vlgmr.msra.gmra.mrb[40].mxu1 %vm127_vm2, %v1702_v3 }
0x1105   :  { %2399 = vmatprep.mubr.msk.bf16.mxu1 %vm2602_vm0, %v2601_v1  ;;  %2392 = vmatpush3.bf16.msra.mxu1 %v2469_v26 }
0x1106   :  { %2393 = vmatprep.subr.bf16.mxu1 %v2601_v1 }
0x1109   :  { %2394 = vmatpush3.bf16.msra.mxu1 %v2470_v27 }
0x110a   :  { %2395 = vmatprep.subr.bf16.mxu1 %v2601_v1 }
0x110d   :  { %2396 = vmatpush3.bf16.msra.mxu1 %v2471_v55 }
0x110e   :  { %2397 = vmatprep.subr.bf16.mxu1 %v2601_v1 }
0x1111   :  { %2398 = vmatpush3.bf16.msra.mxu1 %v2472_v56 }
0x11d7   :  { %v1757_v4 = vpop.f32.mrb[40].mxu1 }
0x11d8   :  { %v1764_v7 = vadd.f32 %v1757_v4, %v2943_v45  ;;  %v2381_v35 = vpop.f32.mrb[41].mxu1 }
0x11d9   :  { %v1760_v8 = vpop.f32.mrb[42].mxu1 }
0x11da   :  { %v3085_v11 = vadd.f32 %v2136_v5, %v1764_v7  ;;  %v1765_v13 = vadd.f32 %v1760_v8, %v2946_v6  ;;  %v2382_v14 = vpop.f32.mrb[43].mxu1 }
0x11dc   :  { %v3088_v15 = vadd.f32 %v2136_v5, %v1765_v13  ;;  %v1780_v16 = vsel %vm127_vm2, %v3085_v11, 0.0  ;;  %v2164_v5 = vld [vmem:[%s3174_s13 + $0x1] ss:$0 sm:$0xff] }
0x11dd   :  { %1781 = vadd.xlane.f32.xlu0 %v1780_v16 }
0x11de   :  { %v1783_v17 = vsel %vm127_vm2, %v3088_v15, 0.0 }
0x11df   :  { %1784 = vadd.xlane.f32.xlu1 %v1783_v17 }
0x126a   :  { %v1782_v18 = vpop.xlane.xlu0 %1781 }
0x126b   :  { %v1786_v19 = vmul.f32 0.03125, %v1782_v18 }
0x126c   :  { %v1785_v45 = vpop.xlane.xlu1 %1784 }
0x126d   :  { %v1788_v20 = vsub.f32 %v3085_v11, %v1786_v19  ;;  %v1787_v21 = vmul.f32 0.03125, %v1785_v45 }
0x126f   :  { %v1789_v22 = vsub.f32 %v3088_v15, %v1787_v21  ;;  %v1790_v6 = vmul.f32 %v1788_v20, %v1788_v20  ;;  %v1806_v49 = vmul.f32 %v2139_v47, %v1788_v20 }
0x1271   :  { %v1792_v23 = vsel %vm127_vm2, %v1790_v6, 0.0  ;;  %v1791_v24 = vmul.f32 %v1789_v22, %v1789_v22  ;;  %v1807_v50 = vmul.f32 %v2139_v47, %v1789_v22 }
0x1272   :  { %1793 = vadd.xlane.f32.xlu0 %v1792_v23 }
0x1273   :  { %v1795_v10 = vsel %vm127_vm2, %v1791_v24, 0.0 }
0x1276   :  { %1796 = vadd.xlane.f32.xlu0 %v1795_v10 }
0x12ff   :  { %v1794_v28 = vpop.xlane.xlu0 %1793 }
0x1300   :  { %v1798_v29 = vmul.f32 0.032258064, %v1794_v28 }
0x1302   :  { %2561 = vrsqrt.f32 %v1798_v29  ;;  %vm1810_vm0 = vcmp.eq.f32.partialorder %v1798_v29, inf  ;;  %v1813_v34 = vand.u32 2147483648, %v1798_v29  ;;  %vm1812_vm1 = vcmp.eq.f32.partialorder %v1798_v29, 0.0 }
0x1303   :  { %v1797_v30 = vpop.xlane.xlu0 %1796 }
0x1304   :  { %v1799_v31 = vmul.f32 0.032258064, %v1797_v30 }
0x1306   :  { %2563 = vrsqrt.f32 %v1799_v31  ;;  %vm1817_vm5 = vcmp.eq.f32.partialorder %v1799_v31, inf  ;;  %v1820_v41 = vand.u32 2147483648, %v1799_v31  ;;  %vm1819_vm6 = vcmp.eq.f32.partialorder %v1799_v31, 0.0 }
0x130c   :  { %v2562_v32 = vpop.eup %2561 }
0x130d   :  { %v1809_v33 = vmul.f32 %v2562_v32, %v1798_v29 }
0x130f   :  { %v1811_v36 = vsel %vm1810_vm0, %v1798_v29, %v1809_v33 }
0x1310   :  { %v2564_v59 = vpop.eup %2563  ;;  %v1814_v37 = vsel %vm1812_vm1, %v1813_v34, %v1811_v36 }
0x1311   :  { %v1822_v38 = vadd.f32 1e-06, %v1814_v37  ;;  %v1816_v39 = vmul.f32 %v2564_v59, %v1799_v31 }
0x1313   :  { %2565 = vrcp.f32 %v1822_v38  ;;  %v1818_v42 = vsel %vm1817_vm5, %v1799_v31, %v1816_v39 }
0x1314   :  { %v1821_v44 = vsel %vm1819_vm6, %v1820_v41, %v1818_v42  ;;  %v2165_v41 = vld [vmem:[%s3177_s16] ss:$0 sm:$0xff]  ;;  %s2577_s16 = scalar_lea.vmem %s2064_s6, 256 }
0x1315   :  { %v1823_v46 = vadd.f32 1e-06, %v1821_v44  ;;  %p2578_p0 = scmp.ne.s32.totalorder %s2064_s6, %s2577_s16  ;;  %p2583_p2 = scmp.lt.s32.totalorder %s2577_s16, %s2577_s16 }
0x1317   :  { %2567 = vrcp.f32 %v1823_v46  ;;  %v2166_v46 = vld [vmem:[%s3178_s17] ss:$0 sm:$0xff]  ;;  %p2584_p3 = por %p2583_p2, %p2582_p1 }
0x1319   :  { %p2585_p4 = pnand %p2584_p3, %p2578_p0 }
0x131d   :  { %v2566_v48 = vpop.eup %2565 }
0x131e   :  { %v1825_v9 = vmul.f32 %v2566_v48, %v1806_v49 }
0x1320   :  { %v1834_v53 = vadd.f32 %v2140_v51, %v1825_v9 }
0x1321   :  { %v2568_v40 = vpop.eup %2567 }
0x1322   :  { %v1827_v52 = vmul.f32 %v2568_v40, %v1807_v50 }
0x1324   :  { %v1835_v43 = vadd.f32 %v2140_v51, %v1827_v52 }
0x1326   :  { %v1836_v54 = vpack.c.bf16 %v1835_v43, %v1834_v53 }
0x1328   :  { %2388 = vmatmul.mubr.msk.bf16.vlgmr.msra.gmra.mrb[48].mxu0 %vm127_vm2, %v1836_v54 }
0x13fb   :  { %v1899_v58 = vpop.f32.mrb[48].mxu0 }
0x13fc   :  { %v1900_v60 = vadd.f32 %v2146_v57, %v1899_v58  ;;  %v2389_v61 = vpop.f32.mrb[49].mxu0 }
0x13fd   :  { %v1902_v62 = vpop.f32.mrb[50].mxu0 }
0x13fe   :  { %v1903_v63 = vadd.f32 %v2146_v57, %v1902_v62  ;;  %v2390_v0 = vpop.f32.mrb[51].mxu0  ;;  %v1906_v2 = vmax.f32 %v1900_v60, 0.0 }
0x1400   :  { %v1907_v3 = vmax.f32 %v1903_v63, 0.0 }
0x1402   :  { %v1908_v4 = vpack.c.bf16 %v1907_v3, %v1906_v2 }
0x1404   :  { %2400 = vmatmul.mubr.msk.bf16.vlgmr.msra.gmra.mrb[44].mxu1 %vm1002_vm13, %v1908_v4 }
0x14d7   :  { %v1979_v1 = vpop.f32.mrb[44].mxu1 }
0x14d8   :  { %v1986_v7 = vadd.f32 %v1979_v1, %v3085_v11  ;;  %v2401_v35 = vpop.f32.mrb[45].mxu1 }
0x14d9   :  { %v1982_v8 = vpop.f32.mrb[46].mxu1 }
0x14da   :  { %v1987_v13 = vadd.f32 %v1982_v8, %v3088_v15  ;;  %v2402_v14 = vpop.f32.mrb[47].mxu1  ;;  %v1996_v16 = vadd.f32 %v2164_v5, %v1986_v7 }
0x14dc   :  { %v2000_v17 = vsel %vm127_vm2, %v1996_v16, 0.0  ;;  %v1997_v18 = vadd.f32 %v2164_v5, %v1987_v13 }
0x14dd   :  { %2001 = vadd.xlane.f32.xlu0 %v2000_v17 }
0x14de   :  { %v2003_v19 = vsel %vm127_vm2, %v1997_v18, 0.0 }
0x14df   :  { %2004 = vadd.xlane.f32.xlu1 %v2003_v19 }
0x156a   :  { %v2002_v45 = vpop.xlane.xlu0 %2001 }
0x156b   :  { %v2006_v20 = vmul.f32 0.03125, %v2002_v45 }
0x156c   :  { %v2005_v21 = vpop.xlane.xlu1 %2004 }
0x156d   :  { %v2008_v22 = vsub.f32 %v1996_v16, %v2006_v20  ;;  %v2007_v6 = vmul.f32 0.03125, %v2005_v21 }
0x156f   :  { %v2009_v23 = vsub.f32 %v1997_v18, %v2007_v6  ;;  %v2010_v11 = vmul.f32 %v2008_v22, %v2008_v22  ;;  %v2026_v42 = vmul.f32 %v2165_v41, %v2008_v22 }
0x1571   :  { %v2012_v24 = vsel %vm127_vm2, %v2010_v11, 0.0  ;;  %v2011_v10 = vmul.f32 %v2009_v23, %v2009_v23  ;;  %v2027_v48 = vmul.f32 %v2165_v41, %v2009_v23 }
0x1572   :  { %2013 = vadd.xlane.f32.xlu0 %v2012_v24 }
0x1573   :  { %v2015_v15 = vsel %vm127_vm2, %v2011_v10, 0.0 }
0x1574   :  { %2016 = vadd.xlane.f32.xlu1 %v2015_v15 }
0x15ff   :  { %v2014_v25 = vpop.xlane.xlu0 %2013 }
0x1600   :  { %v2018_v12 = vmul.f32 0.032258064, %v2014_v25 }
0x1601   :  { %v2017_v26 = vpop.xlane.xlu1 %2016 }
0x1602   :  { %2569 = vrsqrt.f32 %v2018_v12  ;;  %v2019_v27 = vmul.f32 0.032258064, %v2017_v26  ;;  %vm2030_vm7 = vcmp.eq.f32.partialorder %v2018_v12, inf  ;;  %v2033_v30 = vand.u32 2147483648, %v2018_v12 }
0x1603   :  { %vm2032_vm8 = vcmp.eq.f32.partialorder %v2018_v12, 0.0 }
0x1604   :  { %2571 = vrsqrt.f32 %v2019_v27  ;;  %vm2037_vm9 = vcmp.eq.f32.partialorder %v2019_v27, inf  ;;  %v2040_v59 = vand.u32 2147483648, %v2019_v27  ;;  %vm2039_vm10 = vcmp.eq.f32.partialorder %v2019_v27, 0.0 }
0x160c   :  { %v2570_v28 = vpop.eup %2569 }
0x160d   :  { %v2029_v29 = vmul.f32 %v2570_v28, %v2018_v12 }
0x160e   :  { %v2572_v31 = vpop.eup %2571 }
0x160f   :  { %v2031_v32 = vsel %vm2030_vm7, %v2018_v12, %v2029_v29  ;;  %v2036_v34 = vmul.f32 %v2572_v31, %v2019_v27 }
0x1610   :  { %v2034_v33 = vsel %vm2032_vm8, %v2033_v30, %v2031_v32 }
0x1611   :  { %v2042_v36 = vadd.f32 1e-06, %v2034_v33  ;;  %v2038_v37 = vsel %vm2037_vm9, %v2019_v27, %v2036_v34 }
0x1612   :  { %v2041_v38 = vsel %vm2039_vm10, %v2040_v59, %v2038_v37 }
0x1613   :  { %2573 = vrcp.f32 %v2042_v36  ;;  %v2043_v39 = vadd.f32 1e-06, %v2041_v38 }
0x1615   :  { %2575 = vrcp.f32 %v2043_v39 }
0x161d   :  { %v2574_v44 = vpop.eup %2573 }
0x161e   :  { %v2045_v47 = vmul.f32 %v2574_v44, %v2026_v42 }
0x161f   :  { %v2576_v49 = vpop.eup %2575 }
0x1620   :  { %v2054_v50 = vadd.f32 %v2166_v46, %v2045_v47  ;;  %v2047_v9 = vmul.f32 %v2576_v49, %v2027_v48 }
0x1622   :  { %2056 = vst.msk [vmem:[#allocation2] sm:$0xff] %vm127_vm2, %v2054_v50  ;;  %v2055_v40 = vadd.f32 %v2166_v46, %v2047_v9 }
0x1624   :  { %2057 = vst.msk [vmem:[#allocation2 + $0x8] sm:$0xff] %vm127_vm2, %v2055_v40 }
0x1625   :  { %2588 = shalt.err (!%p2585_p4)
}
0x1626   :  { %s2589_s7 = scalar_lea.hbm %s3179_s18, 256 }
0x1627   :  { %p2590_p5 = scmp.ne.s32.totalorder %s3179_s18, %s2589_s7  ;;  %p2593_p6 = scmp.lt.u32.totalorder %s2589_s7, %s3179_s18 }
0x1629   :  { %p2595_p7 = pnand %p2593_p6, %p2590_p5 }
0x162b   :  { %2598 = shalt.err (!%p2595_p7)
}
0x162c   :  { %s2618_s28 = smov 128  }
0x162d   :  { %2069 = dma.vmem_to_hbm [thread:$0]  %s2064_s6, 256, %s3179_s18, [#allocation3], %s2618_s28, %s2618_s28, %s3197_s20  }
0x162e   :  { %2599 = dma.done.wait [#allocation3], 256  }
0x162f   :  { %2600 = vsyncadd [#allocation3], 4294967040 }
0x1630   :  { %2073 = vsyncpa [#allocation3], 1 }

</bundles_post_ra>
